<compile_context>
chip_gen: v5e
topology: v5e:2x2
jax: 0.10.0
libtpu: 0.0.40
codegen_flags: <defaults>
</compile_context>

<pallas_src>
import math
import functools
import numpy as np

import jax
import jax.numpy as jnp
from jax.experimental import pallas as pl
from jax.experimental.pallas import tpu as pltpu


# ----------------------------- configuration --------------------------------
class Configs:
    num_blocks = 2
    num_octaves = 1
    height = 16
    width = 16
    add_noise = False
    convs_per_block = 4
    num_spheres = 4
    feats_per_layer = 3
    num_layers = 2
    num_basis = 1
    max_chans = 16
    min_chans = 8
    with_pixel_input = True


def get_pos_enc_size(cfg):
    return 2 * 2 * cfg.num_octaves + 2


def get_output_size(cfg):
    n, f, k, nb = cfg.num_spheres, cfg.feats_per_layer, cfg.num_layers, cfg.num_basis
    return n * (k + 1) + k * (f * nb)


def get_inp_out_chans(cfg):
    pos_enc_size = get_pos_enc_size(cfg)
    min_chans = max(1, cfg.num_spheres // 128) * cfg.min_chans
    out_chans = [int(v) for v in np.linspace(cfg.max_chans, min_chans, cfg.num_blocks)]
    in_chans = [pos_enc_size] + [c + pos_enc_size for c in out_chans[:-1]]
    last_chan_in = out_chans[-1] + pos_enc_size
    if cfg.with_pixel_input:
        in_chans = [c + 3 for c in in_chans]
        last_chan_in += 3
    return in_chans, out_chans, last_chan_in


# --------------------------- parameter construction ---------------------------
def init_conv_params(key, cin, cout):
    k1, k2 = jax.random.split(key)
    bound = 1.0 / math.sqrt(cin)
    w = jax.random.uniform(k1, (cout, cin), jnp.float32, -bound, bound)
    b = jax.random.uniform(k2, (cout,), jnp.float32, -bound, bound)
    return w, b


def convblock_params(key, in_c, out_c, convs_per_block):
    inp = [int(v) for v in np.linspace(in_c, out_c, convs_per_block)] + [out_c]
    n1_end = len(inp) // 2
    keys = jax.random.split(key, len(inp) - 1)
    l1 = [init_conv_params(keys[i - 1], inp[i - 1], inp[i]) for i in range(1, n1_end)]
    l2 = [init_conv_params(keys[i - 1], inp[i - 1], inp[i]) for i in range(n1_end, len(inp))]
    return {"l1": l1, "l2": l2}


def build_network_params(key, cfg):
    in_chans, out_chans, last_chan_in = get_inp_out_chans(cfg)
    keys = jax.random.split(key, cfg.num_blocks + 1)
    blocks = [convblock_params(keys[l], in_chans[l], out_chans[l], cfg.convs_per_block)
              for l in range(cfg.num_blocks)]
    out_block = convblock_params(keys[-1], last_chan_in, get_output_size(cfg),
                                 cfg.convs_per_block)
    return {"blocks": blocks, "out_block": out_block}


# ----------------------- buffer packing (8-aligned rows) -----------------------
def _round_up(v, m):
    return ((v + m - 1) // m) * m


class _Packer:
    """Packs many small [rows, cols] f32 blocks into one buffer. Every block is
    placed at an 8-aligned row offset and column 0."""

    def __init__(self):
        self.entries = []
        self.row = 0
        self.max_cols = 1

    def add(self, arr2d):
        arr2d = np.asarray(arr2d, np.float32)
        r0 = self.row
        self.entries.append((r0, arr2d))
        self.row += _round_up(arr2d.shape[0], 8)
        self.max_cols = max(self.max_cols, arr2d.shape[1])
        return r0

    def finalize(self):
        buf = np.zeros((_round_up(max(self.row, 8), 8), self.max_cols), np.float32)
        for r0, a in self.entries:
            buf[r0:r0 + a.shape[0], :a.shape[1]] = a
        return jnp.asarray(buf)


def pack_parameters(params, cfg):
    packer = _Packer()

    def pack_layer(w, b):
        w = np.asarray(w, np.float32)
        b = np.asarray(b, np.float32)
        cout, cin = w.shape
        rw = packer.add(w)
        rb = packer.add(b.reshape(cout, 1))
        return {"w": int(rw), "b": int(rb), "cout": int(cout), "cin": int(cin)}

    def pack_chain(chain):
        return tuple(pack_layer(w, b) for (w, b) in chain)

    blocks_meta = [{"l1": pack_chain(blk["l1"]), "l2": pack_chain(blk["l2"])}
                   for blk in params["blocks"]]
    ob = params["out_block"]
    out_l1 = pack_chain(ob["l1"])
    out_l2_body = pack_chain(ob["l2"][:-1])
    head = pack_layer(*ob["l2"][-1])       # merged alpha/assoc/coefs head (18 rows)

    wbuf = packer.finalize()
    return wbuf, {"blocks": blocks_meta, "out_l1": out_l1,
                  "out_l2_body": out_l2_body, "head": head}


# ------------------- compile-time constants (pos enc / resize) ----------------
def positional_encoding_np(l, cfg):
    scale = 2 ** (cfg.num_blocks - l - 1)
    h, w = cfg.height // scale, cfg.width // scale
    phi = np.broadcast_to(np.linspace(0.0, math.pi, h)[:, None], (h, w))
    theta = np.broadcast_to(np.linspace(2.0 * math.pi, 0.0, w)[None, :], (h, w))
    chans = [phi, theta]
    for o in range(cfg.num_octaves):
        f = 2.0 ** o
        chans.extend([np.sin(phi * f), np.sin(theta * f), np.cos(phi * f), np.cos(theta * f)])
    enc = np.stack(chans, axis=0).astype(np.float32)
    return enc.reshape(enc.shape[0], h * w)          # (pos_enc_size, h*w)


def _bilinear_up2_1d(n_in):
    """(2*n_in, n_in) 1-D bilinear x2 upsample matrix (align_corners=False)."""
    n_out = 2 * n_in
    coord = (np.arange(n_out, dtype=np.float64) + 0.5) * 0.5 - 0.5
    coord = np.maximum(coord, 0.0)                   # PyTorch clamps negatives to 0
    lo = np.minimum(np.floor(coord).astype(np.int64), n_in - 1)
    hi = np.minimum(lo + 1, n_in - 1)
    frac = coord - lo
    m = np.zeros((n_out, n_in), np.float64)
    m[np.arange(n_out), lo] += 1.0 - frac
    m[np.arange(n_out), hi] += frac
    return m


def _down2_matrix(hc, wc):
    """(4*hc*wc, hc*wc): exact /2 bilinear downsample (== 2x2 mean), y = x_fine @ D."""
    hf, wf = 2 * hc, 2 * wc
    m = np.zeros((hf * wf, hc * wc), np.float32)
    for ci in range(hc):
        for cj in range(wc):
            c = ci * wc + cj
            for di in range(2):
                for dj in range(2):
                    f = (2 * ci + di) * wf + (2 * cj + dj)
                    m[f, c] = 0.25
    return m


def pack_constants(cfg, bs):
    """Positional encodings (tiled over the folded batch), block-diagonal
    upsample and downsample matrices, all packed into ONE wide constant buffer."""
    packer = _Packer()
    nb = cfg.num_blocks
    pe_meta, up_meta, down_meta = [], [], []
    eye_bs = np.eye(bs, dtype=np.float32)

    for i in range(nb):
        pe = positional_encoding_np(i, cfg)                   # (pe_size, S_i)
        pe_t = np.tile(pe, (1, bs))                           # (pe_size, bs*S_i)
        r = packer.add(pe_t)
        pe_meta.append((int(r), int(pe_t.shape[0]), int(pe_t.shape[1])))

    for i in range(nb - 1):
        scale = 2 ** (nb - 1 - i)
        h, w = cfg.height // scale, cfg.width // scale        # coarse level i dims
        up_t = np.kron(_bilinear_up2_1d(h), _bilinear_up2_1d(w)).T  # (S_i, S_{i+1})
        up_b = np.kron(eye_bs, up_t)
        r = packer.add(up_b)
        up_meta.append((int(r), int(up_b.shape[0]), int(up_b.shape[1])))

        dn = _down2_matrix(h, w)                              # (S_{i+1}, S_i)
        dn_b = np.kron(eye_bs, dn)
        r = packer.add(dn_b)
        down_meta.append((int(r), int(dn_b.shape[0]), int(dn_b.shape[1])))

    cbuf = packer.finalize()
    return cbuf, {"pe": pe_meta, "up": up_meta, "down": down_meta}


# ------------------------------ fused Pallas kernel ---------------------------
def _somsi_kernel(meta, rgb_ref, c_ref, w_ref, out_ref):
    """One grid step == one batch shard; activations are (C, Bs*H*W) in VMEM."""
    nb = meta["num_blocks"]
    ns = meta["num_spheres"]
    nl = meta["num_layers"]

    def cslice(desc):
        r0, rows, cols = desc
        return c_ref[r0:r0 + rows, 0:cols]

    def layer(d, x, relu):
        y = jnp.dot(w_ref[d["w"]:d["w"] + d["cout"], 0:d["cin"]], x,
                    preferred_element_type=jnp.float32)
        y = y + w_ref[d["b"]:d["b"] + d["cout"], 0:1]
        if relu:
            y = jnp.maximum(y, 0.0)
        return y

    def chain(descs, x, relus):
        for d, r in zip(descs, relus):
            x = layer(d, x, r)
        return x

    # rgb pyramid (exact /2 bilinear == 2x2 mean) computed in-kernel, coarse <- fine.
    rgb_levels = [None] * nb
    rgb_levels[nb - 1] = rgb_ref[0]                            # (3, Bs*S_fine)
    for i in range(nb - 2, -1, -1):
        rgb_levels[i] = jnp.dot(rgb_levels[i + 1], cslice(meta["down"][i]),
                                preferred_element_type=jnp.float32)

    prev = rgb = pe = None
    for i in range(nb):
        last = (i == nb - 1)
        rgb = rgb_levels[i]
        pe = cslice(meta["pe"][i])
        # torch.cat([prev?, rgb, pos_enc]) -> one sublane concat, then single dots.
        x = jnp.concatenate([rgb, pe] if i == 0 else [prev, rgb, pe], axis=0)
        bm = meta["blocks"][i]
        x = chain(bm["l1"], x, (True,) * len(bm["l1"]))
        if not last:
            # separable 2x bilinear upsample as one matmul with a constant matrix
            x = jnp.dot(x, cslice(meta["up"][i]), preferred_element_type=jnp.float32)
        prev = chain(bm["l2"], x, (True,) * (len(bm["l2"]) - 1) + (not last,))

    # out_block (last=True); its final conv is the merged head below.
    x = jnp.concatenate([prev, rgb, pe], axis=0)
    x = chain(meta["out_l1"], x, (True,) * len(meta["out_l1"]))
    x = chain(meta["out_l2_body"], x, (True,) * len(meta["out_l2_body"]))

    # Merged head: ONE (ns + ns*nl + ncoef, C) matmul for alpha/assoc/coefs.
    y = layer(meta["head"], x, relu=False)

    alpha = jax.nn.sigmoid(y[0:ns, :])

    # per-sphere softmax over layers (channels are sphere-major, layer-minor),
    # per-GROUP max (no global-max underflow hazard), divide on EUP.
    assoc_parts = []
    for s in range(ns):
        grp = y[ns + s * nl: ns + (s + 1) * nl, :]
        m = jnp.max(grp, axis=0, keepdims=True)
        e = jnp.exp(grp - m)
        den = jnp.sum(e, axis=0, keepdims=True)
        assoc_parts.append(e * pl.reciprocal(den, approx=True))

    coefs = y[ns + ns * nl:, :]
    if meta["tanh_coefs"]:
        coefs = jnp.tanh(coefs)

    # single merged lane-dense output store
    out_ref[0] = jnp.concatenate([alpha] + assoc_parts + [coefs], axis=0)


# ------------------------------- forward wrapper ------------------------------
def somsi_forward(cfg, meta, num_shards, wbuf, cbuf, x_nchw):
    B, _, H, W = x_nchw.shape
    assert (H, W) == (cfg.height, cfg.width)
    G = num_shards
    Bs = B // G
    S = H * W
    ns, nl = cfg.num_spheres, cfg.num_layers
    ncoef = nl * cfg.feats_per_layer * cfg.num_basis
    n_out = ns + ns * nl + ncoef

    # fold batch into the lane axis: (B,3,H,W) -> (G, 3, Bs*H*W), batch-major lanes
    rgb = x_nchw.reshape(G, Bs, 3, S).transpose(0, 2, 1, 3).reshape(G, 3, Bs * S)

    out = pl.pallas_call(
        functools.partial(_somsi_kernel, meta),
        out_shape=jax.ShapeDtypeStruct((G, n_out, Bs * S), jnp.float32),
        grid=(G,),
        in_specs=[pl.BlockSpec((1, 3, Bs * S), lambda g: (g, 0, 0)),
                  pl.BlockSpec(cbuf.shape, lambda g: (0, 0)),
                  pl.BlockSpec(wbuf.shape, lambda g: (0, 0))],
        out_specs=pl.BlockSpec((1, n_out, Bs * S), lambda g: (g, 0, 0)),
        compiler_params=pltpu.CompilerParams(dimension_semantics=("parallel",)),
    )(rgb, cbuf, wbuf)

    full = (out.reshape(G, n_out, Bs, H, W)
               .transpose(0, 2, 1, 3, 4)
               .reshape(B, n_out, H, W))
    return {"alpha": full[:, :ns],
            "assoc": full[:, ns:ns + ns * nl],
            "coefs": full[:, ns + ns * nl:ns + ns * nl + ncoef]}


# --------------------------- pure-JAX (XLA) reference --------------------------
def _up_idx_np(n_out, n_in):
    coord = (np.arange(n_out, dtype=np.float64) + 0.5) * (n_in / n_out) - 0.5
    coord = np.maximum(coord, 0.0)
    lo = np.minimum(np.floor(coord).astype(np.int64), n_in - 1)
    hi = np.minimum(lo + 1, n_in - 1)
    frac = (coord - lo).astype(np.float32)
    return lo, hi, frac


def _ref_up2(x):
    _, _, h, w = x.shape
    lo_h, hi_h, fh = _up_idx_np(2 * h, h)
    lo_w, hi_w, fw = _up_idx_np(2 * w, w)
    top = (x[:, :, lo_h, :] * (1.0 - fh)[None, None, :, None]
           + x[:, :, hi_h, :] * fh[None, None, :, None])
    return (top[:, :, :, lo_w] * (1.0 - fw)[None, None, None, :]
            + top[:, :, :, hi_w] * fw[None, None, None, :])


def _ref_chain(x, layers, relus):
    for (w, b), r in zip(layers, relus):
        x = jnp.einsum('oc,bchw->bohw', w, x,
                       precision=jax.lax.Precision.HIGHEST) + b[None, :, None, None]
        if r:
            x = jnp.maximum(x, 0.0)
    return x


def _ref_block(p, x, last):
    x = _ref_chain(x, p["l1"], [True] * len(p["l1"]))
    if not last:
        x = _ref_up2(x)
    n2 = len(p["l2"])
    return _ref_chain(x, p["l2"], [True] * (n2 - 1) + [not last])


def reference_forward(params, cfg, x):
    nb = cfg.num_blocks
    levels = [x]
    for _ in range(1, nb):
        b_, c_, h_, w_ = levels[-1].shape
        levels.append(levels[-1].reshape(b_, c_, h_ // 2, 2, w_ // 2, 2).mean(axis=(3, 5)))
    levels = levels[::-1]
    prev = pe = rgb = None
    for i in range(nb):
        rgb = levels[i]
        b_, _, h_, w_ = rgb.shape
        pe_np = positional_encoding_np(i, cfg).reshape(-1, h_, w_)
        pe = jnp.broadcast_to(jnp.asarray(pe_np)[None], (b_, pe_np.shape[0], h_, w_))
        xin = jnp.concatenate([rgb, pe] if i == 0 else [prev, rgb, pe], axis=1)
        prev = _ref_block(params["blocks"][i], xin, last=(i == nb - 1))
    xin = jnp.concatenate([prev, rgb, pe], axis=1)
    out = _ref_block(params["out_block"], xin, last=True)

    ns, nl = cfg.num_spheres, cfg.num_layers
    ncoef = nl * cfg.feats_per_layer * cfg.num_basis
    b_, _, h_, w_ = out.shape
    alpha = jax.nn.sigmoid(out[:, :ns])
    assoc = jax.nn.softmax(out[:, ns:ns + ns * nl].reshape(b_, ns, nl, h_, w_),
                           axis=2).reshape(b_, ns * nl, h_, w_)
    coefs = out[:, ns + ns * nl:ns + ns * nl + ncoef]
    if cfg.feats_per_layer == 3:
        coefs = jnp.tanh(coefs)
    return {"alpha": alpha, "assoc": assoc, "coefs": coefs}


# ----------------------------------- main --------------------------------------
if __name__ == "__main__":
    cfg = Configs()
    pkey, xkey = jax.random.split(jax.random.PRNGKey(0))
    params = build_network_params(pkey, cfg)

    B = 2
    x = jax.random.uniform(xkey, (B, 3, cfg.height, cfg.width), jnp.float32)

    # Fold batch into lanes; shard 2-ways only when the batch is large enough to
    # keep both v7x TensorCores busy without regressing back to per-batch steps.
    G = 2 if (B >= 4 and B % 2 == 0) else 1
    Bs = B // G

    wbuf, layer_meta = pack_parameters(params, cfg)
    cbuf, const_meta = pack_constants(cfg, Bs)
    meta = dict(layer_meta)
    meta.update(const_meta)
    meta.update(num_blocks=cfg.num_blocks,
                num_spheres=cfg.num_spheres,
                num_layers=cfg.num_layers,
                tanh_coefs=(cfg.feats_per_layer == 3))

    fwd = jax.jit(functools.partial(somsi_forward, cfg, meta, G))
    out = jax.block_until_ready(fwd(wbuf, cbuf, x))

    ns, nl = cfg.num_spheres, cfg.num_layers
    ncoef = nl * cfg.feats_per_layer * cfg.num_basis
    assert out["alpha"].shape == (B, ns, cfg.height, cfg.width)
    assert out["assoc"].shape == (B, ns * nl, cfg.height, cfg.width)
    assert out["coefs"].shape == (B, ncoef, cfg.height, cfg.width)

    # cross-check fused Pallas kernel against a plain-XLA reference of the module
    ref = reference_forward(params, cfg, x)
    for k in ("alpha", "assoc", "coefs"):
        np.testing.assert_allclose(np.asarray(out[k]), np.asarray(ref[k]),
                                   rtol=2e-2, atol=2e-2)

    print("KERNEL_OK")
</pallas_src>

<mosaic_0001>
module attributes {stable_mosaic.version = 11 : i64} {
  func.func @_somsi_kernel(%arg0: i32, %arg1: memref<1x3x512xf32, #tpu.memory_space<vmem>>, %arg2: memref<656x512xf32, #tpu.memory_space<vmem>>, %arg3: memref<432x25xf32, #tpu.memory_space<vmem>>, %arg4: memref<1x18x512xf32, #tpu.memory_space<vmem>>) attributes {dimension_semantics = [#tpu.dimension_semantics<parallel>], iteration_bounds = array<i64: 1>, scalar_prefetch = 0 : i64, scratch_operands = 0 : i64, tpu.core_type = #tpu.core_type<tc>, window_params = [{transform_indices = @transform_0, window_bounds = array<i64: 1, 3, 512>}, {pipeline_mode = #tpu.pipeline_mode<synchronous>, transform_indices = @transform_1, window_bounds = array<i64: 656, 512>}, {pipeline_mode = #tpu.pipeline_mode<synchronous>, transform_indices = @transform_2, window_bounds = array<i64: 432, 25>}, {transform_indices = @transform_3, window_bounds = array<i64: 1, 18, 512>}]} {
    %c0 = arith.constant 0 : index
    %c0_0 = arith.constant 0 : index
    %c0_1 = arith.constant 0 : index
    %0 = vector.load %arg1[%c0, %c0_0, %c0_1] : memref<1x3x512xf32, #tpu.memory_space<vmem>>, vector<1x3x512xf32>
    %1 = vector.shape_cast %0 : vector<1x3x512xf32> to vector<3x512xf32>
    %c144 = arith.constant 144 : index
    %c0_2 = arith.constant 0 : index
    %2 = vector.load %arg2[%c144, %c0_2] : memref<656x512xf32, #tpu.memory_space<vmem>>, vector<512x128xf32>
    %cst = arith.constant dense<0.000000e+00> : vector<3x128xf32>
    %3 = tpu.matmul %1, %2, %cst {dimension_numbers = #tpu.dot_dimension_numbers<[1], [0], [0], [1], [0, 0, 1, 1], [], []>} : vector<3x512xf32>, vector<512x128xf32>, vector<3x128xf32> -> vector<3x128xf32>
    %c0_3 = arith.constant 0 : index
    %c0_4 = arith.constant 0 : index
    %4 = vector.load %arg2[%c0_3, %c0_4] : memref<656x512xf32, #tpu.memory_space<vmem>>, vector<6x128xf32>
    %5 = tpu.concatenate %3, %4 in 0 : vector<3x128xf32>, vector<6x128xf32> -> vector<9x128xf32>
    %c0_5 = arith.constant 0 : index
    %c0_6 = arith.constant 0 : index
    %6 = vector.load %arg3[%c0_5, %c0_6] : memref<432x25xf32, #tpu.memory_space<vmem>>, vector<11x9xf32>
    %cst_7 = arith.constant dense<0.000000e+00> : vector<11x128xf32>
    %7 = tpu.matmul %6, %5, %cst_7 {dimension_numbers = #tpu.dot_dimension_numbers<[1], [0], [0], [1], [0, 0, 1, 1], [], []>} : vector<11x9xf32>, vector<9x128xf32>, vector<11x128xf32> -> vector<11x128xf32>
    %c16 = arith.constant 16 : index
    %c0_8 = arith.constant 0 : index
    %8 = vector.load %arg3[%c16, %c0_8] : memref<432x25xf32, #tpu.memory_space<vmem>>, vector<11x1xf32>
    %9 = vector.broadcast %8 : vector<11x1xf32> to vector<11x128xf32>
    %10 = arith.addf %7, %9 : vector<11x128xf32>
    %cst_9 = arith.constant 0.000000e+00 : f32
    %11 = vector.broadcast %cst_9 : f32 to vector<11x128xf32>
    %12 = arith.maximumf %10, %11 : vector<11x128xf32>
    %c16_10 = arith.constant 16 : index
    %c0_11 = arith.constant 0 : index
    %13 = vector.load %arg2[%c16_10, %c0_11] : memref<656x512xf32, #tpu.memory_space<vmem>>, vector<128x512xf32>
    %cst_12 = arith.constant dense<0.000000e+00> : vector<11x512xf32>
    %14 = tpu.matmul %12, %13, %cst_12 {dimension_numbers = #tpu.dot_dimension_numbers<[1], [0], [0], [1], [0, 0, 1, 1], [], []>} : vector<11x128xf32>, vector<128x512xf32>, vector<11x512xf32> -> vector<11x512xf32>
    %c32 = arith.constant 32 : index
    %c0_13 = arith.constant 0 : index
    %15 = vector.load %arg3[%c32, %c0_13] : memref<432x25xf32, #tpu.memory_space<vmem>>, vector<13x11xf32>
    %cst_14 = arith.constant dense<0.000000e+00> : vector<13x512xf32>
    %16 = tpu.matmul %15, %14, %cst_14 {dimension_numbers = #tpu.dot_dimension_numbers<[1], [0], [0], [1], [0, 0, 1, 1], [], []>} : vector<13x11xf32>, vector<11x512xf32>, vector<13x512xf32> -> vector<13x512xf32>
    %c48 = arith.constant 48 : index
    %c0_15 = arith.constant 0 : index
    %17 = vector.load %arg3[%c48, %c0_15] : memref<432x25xf32, #tpu.memory_space<vmem>>, vector<13x1xf32>
    %18 = vector.broadcast %17 : vector<13x1xf32> to vector<13x512xf32>
    %19 = arith.addf %16, %18 : vector<13x512xf32>
    %cst_16 = arith.constant 0.000000e+00 : f32
    %20 = vector.broadcast %cst_16 : f32 to vector<13x512xf32>
    %21 = arith.maximumf %19, %20 : vector<13x512xf32>
    %c64 = arith.constant 64 : index
    %c0_17 = arith.constant 0 : index
    %22 = vector.load %arg3[%c64, %c0_17] : memref<432x25xf32, #tpu.memory_space<vmem>>, vector<16x13xf32>
    %cst_18 = arith.constant dense<0.000000e+00> : vector<16x512xf32>
    %23 = tpu.matmul %22, %21, %cst_18 {dimension_numbers = #tpu.dot_dimension_numbers<[1], [0], [0], [1], [0, 0, 1, 1], [], []>} : vector<16x13xf32>, vector<13x512xf32>, vector<16x512xf32> -> vector<16x512xf32>
    %c80 = arith.constant 80 : index
    %c0_19 = arith.constant 0 : index
    %24 = vector.load %arg3[%c80, %c0_19] : memref<432x25xf32, #tpu.memory_space<vmem>>, vector<16x1xf32>
    %25 = vector.broadcast %24 : vector<16x1xf32> to vector<16x512xf32>
    %26 = arith.addf %23, %25 : vector<16x512xf32>
    %cst_20 = arith.constant 0.000000e+00 : f32
    %27 = vector.broadcast %cst_20 : f32 to vector<16x512xf32>
    %28 = arith.maximumf %26, %27 : vector<16x512xf32>
    %c96 = arith.constant 96 : index
    %c0_21 = arith.constant 0 : index
    %29 = vector.load %arg3[%c96, %c0_21] : memref<432x25xf32, #tpu.memory_space<vmem>>, vector<16x16xf32>
    %cst_22 = arith.constant dense<0.000000e+00> : vector<16x512xf32>
    %30 = tpu.matmul %29, %28, %cst_22 {dimension_numbers = #tpu.dot_dimension_numbers<[1], [0], [0], [1], [0, 0, 1, 1], [], []>} : vector<16x16xf32>, vector<16x512xf32>, vector<16x512xf32> -> vector<16x512xf32>
    %c112 = arith.constant 112 : index
    %c0_23 = arith.constant 0 : index
    %31 = vector.load %arg3[%c112, %c0_23] : memref<432x25xf32, #tpu.memory_space<vmem>>, vector<16x1xf32>
    %32 = vector.broadcast %31 : vector<16x1xf32> to vector<16x512xf32>
    %33 = arith.addf %30, %32 : vector<16x512xf32>
    %cst_24 = arith.constant 0.000000e+00 : f32
    %34 = vector.broadcast %cst_24 : f32 to vector<16x512xf32>
    %35 = arith.maximumf %33, %34 : vector<16x512xf32>
    %c8 = arith.constant 8 : index
    %c0_25 = arith.constant 0 : index
    %36 = vector.load %arg2[%c8, %c0_25] : memref<656x512xf32, #tpu.memory_space<vmem>>, vector<6x512xf32>
    %37 = tpu.concatenate %35, %1, %36 in 0 : vector<16x512xf32>, vector<3x512xf32>, vector<6x512xf32> -> vector<25x512xf32>
    %c128 = arith.constant 128 : index
    %c0_26 = arith.constant 0 : index
    %38 = vector.load %arg3[%c128, %c0_26] : memref<432x25xf32, #tpu.memory_space<vmem>>, vector<19x25xf32>
    %cst_27 = arith.constant dense<0.000000e+00> : vector<19x512xf32>
    %39 = tpu.matmul %38, %37, %cst_27 {dimension_numbers = #tpu.dot_dimension_numbers<[1], [0], [0], [1], [0, 0, 1, 1], [], []>} : vector<19x25xf32>, vector<25x512xf32>, vector<19x512xf32> -> vector<19x512xf32>
    %c152 = arith.constant 152 : index
    %c0_28 = arith.constant 0 : index
    %40 = vector.load %arg3[%c152, %c0_28] : memref<432x25xf32, #tpu.memory_space<vmem>>, vector<19x1xf32>
    %41 = vector.broadcast %40 : vector<19x1xf32> to vector<19x512xf32>
    %42 = arith.addf %39, %41 : vector<19x512xf32>
    %cst_29 = arith.constant 0.000000e+00 : f32
    %43 = vector.broadcast %cst_29 : f32 to vector<19x512xf32>
    %44 = arith.maximumf %42, %43 : vector<19x512xf32>
    %c176 = arith.constant 176 : index
    %c0_30 = arith.constant 0 : index
    %45 = vector.load %arg3[%c176, %c0_30] : memref<432x25xf32, #tpu.memory_space<vmem>>, vector<13x19xf32>
    %cst_31 = arith.constant dense<0.000000e+00> : vector<13x512xf32>
    %46 = tpu.matmul %45, %44, %cst_31 {dimension_numbers = #tpu.dot_dimension_numbers<[1], [0], [0], [1], [0, 0, 1, 1], [], []>} : vector<13x19xf32>, vector<19x512xf32>, vector<13x512xf32> -> vector<13x512xf32>
    %c192 = arith.constant 192 : index
    %c0_32 = arith.constant 0 : index
    %47 = vector.load %arg3[%c192, %c0_32] : memref<432x25xf32, #tpu.memory_space<vmem>>, vector<13x1xf32>
    %48 = vector.broadcast %47 : vector<13x1xf32> to vector<13x512xf32>
    %49 = arith.addf %46, %48 : vector<13x512xf32>
    %cst_33 = arith.constant 0.000000e+00 : f32
    %50 = vector.broadcast %cst_33 : f32 to vector<13x512xf32>
    %51 = arith.maximumf %49, %50 : vector<13x512xf32>
    %c208 = arith.constant 208 : index
    %c0_34 = arith.constant 0 : index
    %52 = vector.load %arg3[%c208, %c0_34] : memref<432x25xf32, #tpu.memory_space<vmem>>, vector<8x13xf32>
    %cst_35 = arith.constant dense<0.000000e+00> : vector<8x512xf32>
    %53 = tpu.matmul %52, %51, %cst_35 {dimension_numbers = #tpu.dot_dimension_numbers<[1], [0], [0], [1], [0, 0, 1, 1], [], []>} : vector<8x13xf32>, vector<13x512xf32>, vector<8x512xf32> -> vector<8x512xf32>
    %c216 = arith.constant 216 : index
    %c0_36 = arith.constant 0 : index
    %54 = vector.load %arg3[%c216, %c0_36] : memref<432x25xf32, #tpu.memory_space<vmem>>, vector<8x1xf32>
    %55 = vector.broadcast %54 : vector<8x1xf32> to vector<8x512xf32>
    %56 = arith.addf %53, %55 : vector<8x512xf32>
    %cst_37 = arith.constant 0.000000e+00 : f32
    %57 = vector.broadcast %cst_37 : f32 to vector<8x512xf32>
    %58 = arith.maximumf %56, %57 : vector<8x512xf32>
    %c224 = arith.constant 224 : index
    %c0_38 = arith.constant 0 : index
    %59 = vector.load %arg3[%c224, %c0_38] : memref<432x25xf32, #tpu.memory_space<vmem>>, vector<8x8xf32>
    %cst_39 = arith.constant dense<0.000000e+00> : vector<8x512xf32>
    %60 = tpu.matmul %59, %58, %cst_39 {dimension_numbers = #tpu.dot_dimension_numbers<[1], [0], [0], [1], [0, 0, 1, 1], [], []>} : vector<8x8xf32>, vector<8x512xf32>, vector<8x512xf32> -> vector<8x512xf32>
    %c232 = arith.constant 232 : index
    %c0_40 = arith.constant 0 : index
    %61 = vector.load %arg3[%c232, %c0_40] : memref<432x25xf32, #tpu.memory_space<vmem>>, vector<8x1xf32>
    %62 = vector.broadcast %61 : vector<8x1xf32> to vector<8x512xf32>
    %63 = arith.addf %60, %62 : vector<8x512xf32>
    %64 = tpu.concatenate %63, %1, %36 in 0 : vector<8x512xf32>, vector<3x512xf32>, vector<6x512xf32> -> vector<17x512xf32>
    %c240 = arith.constant 240 : index
    %c0_41 = arith.constant 0 : index
    %65 = vector.load %arg3[%c240, %c0_41] : memref<432x25xf32, #tpu.memory_space<vmem>>, vector<17x17xf32>
    %cst_42 = arith.constant dense<0.000000e+00> : vector<17x512xf32>
    %66 = tpu.matmul %65, %64, %cst_42 {dimension_numbers = #tpu.dot_dimension_numbers<[1], [0], [0], [1], [0, 0, 1, 1], [], []>} : vector<17x17xf32>, vector<17x512xf32>, vector<17x512xf32> -> vector<17x512xf32>
    %c264 = arith.constant 264 : index
    %c0_43 = arith.constant 0 : index
    %67 = vector.load %arg3[%c264, %c0_43] : memref<432x25xf32, #tpu.memory_space<vmem>>, vector<17x1xf32>
    %68 = vector.broadcast %67 : vector<17x1xf32> to vector<17x512xf32>
    %69 = arith.addf %66, %68 : vector<17x512xf32>
    %cst_44 = arith.constant 0.000000e+00 : f32
    %70 = vector.broadcast %cst_44 : f32 to vector<17x512xf32>
    %71 = arith.maximumf %69, %70 : vector<17x512xf32>
    %c288 = arith.constant 288 : index
    %c0_45 = arith.constant 0 : index
    %72 = vector.load %arg3[%c288, %c0_45] : memref<432x25xf32, #tpu.memory_space<vmem>>, vector<17x17xf32>
    %cst_46 = arith.constant dense<0.000000e+00> : vector<17x512xf32>
    %73 = tpu.matmul %72, %71, %cst_46 {dimension_numbers = #tpu.dot_dimension_numbers<[1], [0], [0], [1], [0, 0, 1, 1], [], []>} : vector<17x17xf32>, vector<17x512xf32>, vector<17x512xf32> -> vector<17x512xf32>
    %c312 = arith.constant 312 : index
    %c0_47 = arith.constant 0 : index
    %74 = vector.load %arg3[%c312, %c0_47] : memref<432x25xf32, #tpu.memory_space<vmem>>, vector<17x1xf32>
    %75 = vector.broadcast %74 : vector<17x1xf32> to vector<17x512xf32>
    %76 = arith.addf %73, %75 : vector<17x512xf32>
    %cst_48 = arith.constant 0.000000e+00 : f32
    %77 = vector.broadcast %cst_48 : f32 to vector<17x512xf32>
    %78 = arith.maximumf %76, %77 : vector<17x512xf32>
    %c336 = arith.constant 336 : index
    %c0_49 = arith.constant 0 : index
    %79 = vector.load %arg3[%c336, %c0_49] : memref<432x25xf32, #tpu.memory_space<vmem>>, vector<18x17xf32>
    %cst_50 = arith.constant dense<0.000000e+00> : vector<18x512xf32>
    %80 = tpu.matmul %79, %78, %cst_50 {dimension_numbers = #tpu.dot_dimension_numbers<[1], [0], [0], [1], [0, 0, 1, 1], [], []>} : vector<18x17xf32>, vector<17x512xf32>, vector<18x512xf32> -> vector<18x512xf32>
    %c360 = arith.constant 360 : index
    %c0_51 = arith.constant 0 : index
    %81 = vector.load %arg3[%c360, %c0_51] : memref<432x25xf32, #tpu.memory_space<vmem>>, vector<18x1xf32>
    %82 = vector.broadcast %81 : vector<18x1xf32> to vector<18x512xf32>
    %83 = arith.addf %80, %82 : vector<18x512xf32>
    %cst_52 = arith.constant 0.000000e+00 : f32
    %84 = vector.broadcast %cst_52 : f32 to vector<18x512xf32>
    %85 = arith.maximumf %83, %84 : vector<18x512xf32>
    %c384 = arith.constant 384 : index
    %c0_53 = arith.constant 0 : index
    %86 = vector.load %arg3[%c384, %c0_53] : memref<432x25xf32, #tpu.memory_space<vmem>>, vector<18x18xf32>
    %cst_54 = arith.constant dense<0.000000e+00> : vector<18x512xf32>
    %87 = tpu.matmul %86, %85, %cst_54 {dimension_numbers = #tpu.dot_dimension_numbers<[1], [0], [0], [1], [0, 0, 1, 1], [], []>} : vector<18x18xf32>, vector<18x512xf32>, vector<18x512xf32> -> vector<18x512xf32>
    %c408 = arith.constant 408 : index
    %c0_55 = arith.constant 0 : index
    %88 = vector.load %arg3[%c408, %c0_55] : memref<432x25xf32, #tpu.memory_space<vmem>>, vector<18x1xf32>
    %89 = vector.broadcast %88 : vector<18x1xf32> to vector<18x512xf32>
    %90 = arith.addf %87, %89 : vector<18x512xf32>
    %91 = vector.extract_strided_slice %90 {offsets = [0, 0], sizes = [4, 512], strides = [1, 1]} : vector<18x512xf32> to vector<4x512xf32>
    %92 = arith.negf %91 : vector<4x512xf32>
    %93 = math.exp %92 : vector<4x512xf32>
    %cst_56 = arith.constant 1.000000e+00 : f32
    %94 = vector.broadcast %cst_56 : f32 to vector<4x512xf32>
    %95 = arith.addf %94, %93 : vector<4x512xf32>
    %96 = arith.divf %94, %95 : vector<4x512xf32>
    %97 = vector.extract_strided_slice %90 {offsets = [4, 0], sizes = [2, 512], strides = [1, 1]} : vector<18x512xf32> to vector<2x512xf32>
    %cst_57 = arith.constant dense<0xFF800000> : vector<512xf32>
    %98 = vector.multi_reduction <maximumf>, %97, %cst_57 [0] : vector<2x512xf32> to vector<512xf32>
    %99 = vector.shape_cast %98 : vector<512xf32> to vector<1x512xf32>
    %100 = vector.broadcast %99 : vector<1x512xf32> to vector<2x512xf32>
    %101 = arith.subf %97, %100 : vector<2x512xf32>
    %102 = math.exp %101 : vector<2x512xf32>
    %cst_58 = arith.constant dense<0.000000e+00> : vector<512xf32>
    %103 = vector.multi_reduction <add>, %102, %cst_58 [0] : vector<2x512xf32> to vector<512xf32>
    %104 = vector.shape_cast %103 : vector<512xf32> to vector<1x512xf32>
    %105 = tpu.reciprocal %104 {approx = true} : vector<1x512xf32> -> vector<1x512xf32>
    %106 = vector.broadcast %105 : vector<1x512xf32> to vector<2x512xf32>
    %107 = arith.mulf %102, %106 : vector<2x512xf32>
    %108 = vector.extract_strided_slice %90 {offsets = [6, 0], sizes = [2, 512], strides = [1, 1]} : vector<18x512xf32> to vector<2x512xf32>
    %cst_59 = arith.constant dense<0xFF800000> : vector<512xf32>
    %109 = vector.multi_reduction <maximumf>, %108, %cst_59 [0] : vector<2x512xf32> to vector<512xf32>
    %110 = vector.shape_cast %109 : vector<512xf32> to vector<1x512xf32>
    %111 = vector.broadcast %110 : vector<1x512xf32> to vector<2x512xf32>
    %112 = arith.subf %108, %111 : vector<2x512xf32>
    %113 = math.exp %112 : vector<2x512xf32>
    %cst_60 = arith.constant dense<0.000000e+00> : vector<512xf32>
    %114 = vector.multi_reduction <add>, %113, %cst_60 [0] : vector<2x512xf32> to vector<512xf32>
    %115 = vector.shape_cast %114 : vector<512xf32> to vector<1x512xf32>
    %116 = tpu.reciprocal %115 {approx = true} : vector<1x512xf32> -> vector<1x512xf32>
    %117 = vector.broadcast %116 : vector<1x512xf32> to vector<2x512xf32>
    %118 = arith.mulf %113, %117 : vector<2x512xf32>
    %119 = vector.extract_strided_slice %90 {offsets = [8, 0], sizes = [2, 512], strides = [1, 1]} : vector<18x512xf32> to vector<2x512xf32>
    %cst_61 = arith.constant dense<0xFF800000> : vector<512xf32>
    %120 = vector.multi_reduction <maximumf>, %119, %cst_61 [0] : vector<2x512xf32> to vector<512xf32>
    %121 = vector.shape_cast %120 : vector<512xf32> to vector<1x512xf32>
    %122 = vector.broadcast %121 : vector<1x512xf32> to vector<2x512xf32>
    %123 = arith.subf %119, %122 : vector<2x512xf32>
    %124 = math.exp %123 : vector<2x512xf32>
    %cst_62 = arith.constant dense<0.000000e+00> : vector<512xf32>
    %125 = vector.multi_reduction <add>, %124, %cst_62 [0] : vector<2x512xf32> to vector<512xf32>
    %126 = vector.shape_cast %125 : vector<512xf32> to vector<1x512xf32>
    %127 = tpu.reciprocal %126 {approx = true} : vector<1x512xf32> -> vector<1x512xf32>
    %128 = vector.broadcast %127 : vector<1x512xf32> to vector<2x512xf32>
    %129 = arith.mulf %124, %128 : vector<2x512xf32>
    %130 = vector.extract_strided_slice %90 {offsets = [10, 0], sizes = [2, 512], strides = [1, 1]} : vector<18x512xf32> to vector<2x512xf32>
    %cst_63 = arith.constant dense<0xFF800000> : vector<512xf32>
    %131 = vector.multi_reduction <maximumf>, %130, %cst_63 [0] : vector<2x512xf32> to vector<512xf32>
    %132 = vector.shape_cast %131 : vector<512xf32> to vector<1x512xf32>
    %133 = vector.broadcast %132 : vector<1x512xf32> to vector<2x512xf32>
    %134 = arith.subf %130, %133 : vector<2x512xf32>
    %135 = math.exp %134 : vector<2x512xf32>
    %cst_64 = arith.constant dense<0.000000e+00> : vector<512xf32>
    %136 = vector.multi_reduction <add>, %135, %cst_64 [0] : vector<2x512xf32> to vector<512xf32>
    %137 = vector.shape_cast %136 : vector<512xf32> to vector<1x512xf32>
    %138 = tpu.reciprocal %137 {approx = true} : vector<1x512xf32> -> vector<1x512xf32>
    %139 = vector.broadcast %138 : vector<1x512xf32> to vector<2x512xf32>
    %140 = arith.mulf %135, %139 : vector<2x512xf32>
    %141 = vector.extract_strided_slice %90 {offsets = [12, 0], sizes = [6, 512], strides = [1, 1]} : vector<18x512xf32> to vector<6x512xf32>
    %142 = math.tanh %141 : vector<6x512xf32>
    %143 = tpu.concatenate %96, %107, %118, %129, %140, %142 in 0 : vector<4x512xf32>, vector<2x512xf32>, vector<2x512xf32>, vector<2x512xf32>, vector<2x512xf32>, vector<6x512xf32> -> vector<18x512xf32>
    %c0_65 = arith.constant 0 : index
    %c0_66 = arith.constant 0 : index
    %c0_67 = arith.constant 0 : index
    %144 = vector.load %arg4[%c0_65, %c0_66, %c0_67] : memref<1x18x512xf32, #tpu.memory_space<vmem>>, vector<1x18x512xf32>
    %145 = vector.shape_cast %144 : vector<1x18x512xf32> to vector<18x512xf32>
    %146 = vector.shape_cast %143 : vector<18x512xf32> to vector<1x18x512xf32>
    tpu.vector_store %arg4[%c0_65, %c0_66, %c0_67], %146 {strides = array<i32>} : memref<1x18x512xf32, #tpu.memory_space<vmem>>, vector<1x18x512xf32>,
    return
  }
  func.func @transform_0(%arg0: i32) -> (i32, i32, i32) {
    %c0_i32 = arith.constant 0 : i32
    %c0_i32_0 = arith.constant 0 : i32
    %c0_i32_1 = arith.constant 0 : i32
    return %arg0, %c0_i32, %c0_i32_0 : i32, i32, i32
  }
  func.func @transform_1(%arg0: i32) -> (i32, i32) {
    %c0_i32 = arith.constant 0 : i32
    %c0_i32_0 = arith.constant 0 : i32
    %c0_i32_1 = arith.constant 0 : i32
    return %c0_i32, %c0_i32_0 : i32, i32
  }
  func.func @transform_2(%arg0: i32) -> (i32, i32) {
    %c0_i32 = arith.constant 0 : i32
    %c0_i32_0 = arith.constant 0 : i32
    %c0_i32_1 = arith.constant 0 : i32
    return %c0_i32, %c0_i32_0 : i32, i32
  }
  func.func @transform_3(%arg0: i32) -> (i32, i32, i32) {
    %c0_i32 = arith.constant 0 : i32
    %c0_i32_0 = arith.constant 0 : i32
    %c0_i32_1 = arith.constant 0 : i32
    return %arg0, %c0_i32, %c0_i32_0 : i32, i32, i32
  }
}

</mosaic_0001>

<bundles_post_ra>
// kernel: somsi_forward.1
= control target key start
LH: loop header
LB: loop body
LE: loop exit
PB: predicated region body
PF: predicated region fallthrough
CT: control target
= control target key end

     0   :  { %8 = vsyncpa [#allocation3], 0  ;;  %s2664_s15 = smov [#allocation2]   ;;  %s2665_s17 = smov 512   ;;  %s3353_s0 = inlined_call_operand.vmem [shape: f32[1,3,512], index: 0, kind: input, shape index: {}]   ;;  %s3354_s1 = inlined_call_operand.hbm [shape: f32[656,512], index: 1, kind: input, shape index: {}]   ;;  %s3355_s2 = inlined_call_operand.vmem [shape: f32[432,25], index: 2, kind: input, shape index: {}]   ;;  %s3356_s3 = inlined_call_operand.vmem [shape: f32[1,18,512], index: 3, kind: output, shape index: {}]  }
   0x1   :  { %s15_s14 = sshll.u32 %s3354_s1, 4  ;;  %s17_s16 = sshll.u32 %s2664_s15, 4  ;;  %s16_s14 = int_to_ptr.hbm [resolvable:$true] %s15_s14  ;;  %s18_s16 = int_to_ptr.vmem [resolvable:$true] %s17_s16 }
   0x2   :  { %s2666_s18 = smov 32  }
   0x3   :  { %23 = dma.hbm_to_vmem [thread:$0]  %s16_s14, 41984, %s18_s16, [#allocation3], %s2665_s17, %s2665_s17, %s2666_s18  }
   0x4   :  { %2662 = dma.done.wait [#allocation3], 41984  }
   0x5   :  { %2663 = vsyncadd [#allocation3], 4294925312  ;;  %v79_v0 = vld [vmem:[#allocation2 + $0x820] sm:$0xff]  ;;  %v2700_v49 = vld [vmem:[%s3353_s0] sm:$0x77]  ;;  %vm216_vm0 = vcmask 1040384  }
   0x6   :  { %v78_v1 = vld [vmem:[#allocation2 + $0x800] sm:$0xff]  ;;  %149 = vmatpush.msra.mxu2 %v79_v0  ;;  %98 = vst [vmem:[#allocation1] ss:$2 sm:$0xff] %v2700_v49  ;;  %vm193_vm1 = vcmask 1042432   ;;  %vm209_vm2 = vcmask 72704   ;;  %vm414_vm3 = vcmask 89088  }
   0x7   :  { %v95_v2 = vld [vmem:[#allocation2 + $0xa20] sm:$0xff]  ;;  %vm554_vm4 = vcmask 1044480   ;;  %vm547_vm5 = vcmask 105472   ;;  %vm681_vm6 = vcmask 130048   ;;  %vm840_vm7 = vcmask 203776  }
   0x8   :  { %169 = vmatpush.msra.mxu3 %v95_v2  ;;  %v47_v3 = vld [vmem:[#allocation2 + $0x420] sm:$0xff]  ;;  %150 = vmatpush.msra.mxu2 %v78_v1  ;;  %vm988_vm8 = vcmask 154624   ;;  %vm1220_vm9 = vcmask 64512   ;;  %vm1340_vm10 = vcmask 138240   ;;  %vm1813_vm11 = vcmask 1041408  }
   0x9   :  { %v63_v4 = vld [vmem:[#allocation2 + $0x620] sm:$0xff]  ;;  %109 = vmatpush.msra.mxu0 %v47_v3  ;;  %vm1803_vm12 = vcmask 146432   ;;  %vm2006_vm13 = vcmask 1045508   ;;  %vm2095_vm14 = vcmask 1047558   ;;  %vm2260_vm15 = vcmask 1043458  }
   0xa   :  { %v77_v5 = vld [vmem:[#allocation2 + $0x7e0] sm:$0xff]  ;;  %129 = vmatpush.msra.mxu1 %v63_v4 }
   0xb   :  { %v94_v6 = vld [vmem:[#allocation2 + $0xa00] sm:$0xff]  ;;  %151 = vmatpush.msra.mxu2 %v77_v5 }
   0xc   :  { %v46_v7 = vld [vmem:[#allocation2 + $0x400] sm:$0xff]  ;;  %170 = vmatpush.msra.mxu3 %v94_v6  ;;  %v197_v6 = vld [vmem:[%s3355_s2 + $0x10] sm:$0xff] }
   0xd   :  { %v62_v8 = vld [vmem:[#allocation2 + $0x600] sm:$0xff]  ;;  %110 = vmatpush.msra.mxu0 %v46_v7  ;;  %v101_v2 = vld.sshfl [vmem:[#allocation1] sm:$0xff pattern:$0x75316420]  ;;  %v2667_v7 = vmov 0  }
   0xe   :  { %v93_v9 = vld [vmem:[#allocation2 + $0x9e0] sm:$0xff]  ;;  %130 = vmatpush.msra.mxu1 %v62_v8  ;;  %2539 = vset.pattern.permute.xlu0 %v2667_v7  ;;  %v198_v8 = vld [vmem:[%s3355_s2 + $0x18] sm:$0x7] }
   0xf   :  { %v45_v10 = vld [vmem:[#allocation2 + $0x3e0] sm:$0xff]  ;;  %171 = vmatpush.msra.mxu3 %v93_v9  ;;  %2540 = vset.pattern.permute.xlu1 %v2667_v7  ;;  %v670_v9 = vld [vmem:[%s3355_s2 + $0x78] sm:$0xff] }
  0x10   :  { %v76_v11 = vld [vmem:[#allocation2 + $0x7c0] sm:$0xff]  ;;  %111 = vmatpush.msra.mxu0 %v45_v10  ;;  %201 = vperm.xlu0 %2539, %v197_v6   ;;  %v823_v10 = vld [vmem:[%s3355_s2 + $0xa0] sm:$0xff] }
  0x11   :  { %v61_v12 = vld [vmem:[#allocation2 + $0x5e0] sm:$0xff]  ;;  %152 = vmatpush.msra.mxu2 %v76_v11  ;;  %2541 = vset.pattern.permute.xlu2 %v2667_v7  ;;  %v976_v11 = vld [vmem:[%s3355_s2 + $0xc0] sm:$0xff]  ;;  %v265_v7 = vld [vmem:[#allocation2 + $0xe8] sm:$0xff] }
  0x12   :  { %v92_v13 = vld [vmem:[#allocation2 + $0x9c0] sm:$0xff]  ;;  %131 = vmatpush.msra.mxu1 %v61_v12  ;;  %v1324_v12 = vld [vmem:[%s3355_s2 + $0x118] sm:$0x1] }
  0x13   :  { %v44_v14 = vld [vmem:[#allocation2 + $0x3c0] sm:$0xff]  ;;  %172 = vmatpush.msra.mxu3 %v92_v13 }
  0x14   :  { %v60_v15 = vld [vmem:[#allocation2 + $0x5c0] sm:$0xff]  ;;  %112 = vmatpush.msra.mxu0 %v44_v14 }
  0x15   :  { %v75_v16 = vld [vmem:[#allocation2 + $0x7a0] sm:$0xff]  ;;  %132 = vmatpush.msra.mxu1 %v60_v15 }
  0x16   :  { %v91_v17 = vld [vmem:[#allocation2 + $0x9a0] sm:$0xff]  ;;  %153 = vmatpush.msra.mxu2 %v75_v16  ;;  %v1629_v16 = vld [vmem:[%s3355_s2 + $0x178] sm:$0x3] }
  0x17   :  { %v43_v18 = vld [vmem:[#allocation2 + $0x3a0] sm:$0xff]  ;;  %173 = vmatpush.msra.mxu3 %v91_v17  ;;  %v1785_v17 = vld [vmem:[%s3355_s2 + $0x198] sm:$0xff] }
  0x18   :  { %v59_v19 = vld [vmem:[#allocation2 + $0x5a0] sm:$0xff]  ;;  %113 = vmatpush.msra.mxu0 %v43_v18  ;;  %206 = vperm.xlu0 %2539, %v198_v8   ;;  %v266_v8 = vld [vmem:[#allocation2 + $0xf0] sm:$0xff] }
  0x19   :  { %v74_v20 = vld [vmem:[#allocation2 + $0x780] sm:$0xff]  ;;  %133 = vmatpush.msra.mxu1 %v59_v19  ;;  %v305_v19 = vld [vmem:[#allocation2 + $0x228] sm:$0xff] }
  0x1a   :  { %v90_v21 = vld [vmem:[#allocation2 + $0x980] sm:$0xff]  ;;  %154 = vmatpush.msra.mxu2 %v74_v20  ;;  %v306_v20 = vld [vmem:[#allocation2 + $0x230] sm:$0xff] }
  0x1b   :  { %v42_v22 = vld [vmem:[#allocation2 + $0x380] sm:$0xff]  ;;  %174 = vmatpush.msra.mxu3 %v90_v21 }
  0x1c   :  { %v58_v23 = vld [vmem:[#allocation2 + $0x580] sm:$0xff]  ;;  %114 = vmatpush.msra.mxu0 %v42_v22  ;;  %v301_v22 = vld [vmem:[#allocation2 + $0x208] sm:$0xff] }
  0x1d   :  { %v73_v24 = vld [vmem:[#allocation2 + $0x760] sm:$0xff]  ;;  %134 = vmatpush.msra.mxu1 %v58_v23  ;;  %v302_v23 = vld [vmem:[#allocation2 + $0x210] sm:$0xff] }
  0x1e   :  { %v89_v25 = vld [vmem:[#allocation2 + $0x960] sm:$0xff]  ;;  %155 = vmatpush.msra.mxu2 %v73_v24 }
  0x1f   :  { %v41_v26 = vld [vmem:[#allocation2 + $0x360] sm:$0xff]  ;;  %175 = vmatpush.msra.mxu3 %v89_v25 }
  0x20   :  { %v57_v27 = vld [vmem:[#allocation2 + $0x560] sm:$0xff]  ;;  %115 = vmatpush.msra.mxu0 %v41_v26  ;;  %678 = vperm.xlu0 %2539, %v670_v9   ;;  %v267_v9 = vld [vmem:[#allocation2 + $0xf8] sm:$0xff] }
  0x21   :  { %v72_v28 = vld [vmem:[#allocation2 + $0x740] sm:$0xff]  ;;  %135 = vmatpush.msra.mxu1 %v57_v27  ;;  %v297_v27 = vld [vmem:[#allocation2 + $0x1e8] sm:$0xff] }
  0x22   :  { %v88_v29 = vld [vmem:[#allocation2 + $0x940] sm:$0xff]  ;;  %156 = vmatpush.msra.mxu2 %v72_v28 }
  0x23   :  { %v40_v30 = vld [vmem:[#allocation2 + $0x340] sm:$0xff]  ;;  %176 = vmatpush.msra.mxu3 %v88_v29  ;;  %v298_v29 = vld [vmem:[#allocation2 + $0x1f0] sm:$0xff] }
  0x24   :  { %v56_v31 = vld [vmem:[#allocation2 + $0x540] sm:$0xff]  ;;  %116 = vmatpush.msra.mxu0 %v40_v30 }
  0x25   :  { %v71_v32 = vld [vmem:[#allocation2 + $0x720] sm:$0xff]  ;;  %136 = vmatpush.msra.mxu1 %v56_v31  ;;  %v293_v31 = vld [vmem:[#allocation2 + $0x1c8] sm:$0xff] }
  0x26   :  { %v87_v33 = vld [vmem:[#allocation2 + $0x920] sm:$0xff]  ;;  %157 = vmatpush.msra.mxu2 %v71_v32  ;;  %v294_v32 = vld [vmem:[#allocation2 + $0x1d0] sm:$0xff] }
  0x27   :  { %v39_v34 = vld [vmem:[#allocation2 + $0x320] sm:$0xff]  ;;  %177 = vmatpush.msra.mxu3 %v87_v33 }
  0x28   :  { %v55_v35 = vld [vmem:[#allocation2 + $0x520] sm:$0xff]  ;;  %117 = vmatpush.msra.mxu0 %v39_v34  ;;  %832 = vperm.xlu0 %2539, %v823_v10   ;;  %v289_v34 = vld [vmem:[#allocation2 + $0x1a8] sm:$0xff] }
  0x29   :  { %v70_v36 = vld [vmem:[#allocation2 + $0x700] sm:$0xff]  ;;  %137 = vmatpush.msra.mxu1 %v55_v35 }
  0x2a   :  { %v86_v37 = vld [vmem:[#allocation2 + $0x900] sm:$0xff]  ;;  %158 = vmatpush.msra.mxu2 %v70_v36 }
  0x2b   :  { %v38_v38 = vld [vmem:[#allocation2 + $0x300] sm:$0xff]  ;;  %178 = vmatpush.msra.mxu3 %v86_v37  ;;  %v290_v37 = vld [vmem:[#allocation2 + $0x1b0] sm:$0xff] }
  0x2c   :  { %v54_v39 = vld [vmem:[#allocation2 + $0x500] sm:$0xff]  ;;  %118 = vmatpush.msra.mxu0 %v38_v38 }
  0x2d   :  { %v69_v40 = vld [vmem:[#allocation2 + $0x6e0] sm:$0xff]  ;;  %138 = vmatpush.msra.mxu1 %v54_v39 }
  0x2e   :  { %v85_v41 = vld [vmem:[#allocation2 + $0x8e0] sm:$0xff]  ;;  %159 = vmatpush.msra.mxu2 %v69_v40  ;;  %v195_v40 = vld [vmem:[%s3355_s2] sm:$0xff] }
  0x2f   :  { %v37_v42 = vld [vmem:[#allocation2 + $0x2e0] sm:$0xff]  ;;  %179 = vmatpush.msra.mxu3 %v85_v41 }
  0x30   :  { %v53_v43 = vld [vmem:[#allocation2 + $0x4e0] sm:$0xff]  ;;  %119 = vmatpush.msra.mxu0 %v37_v42  ;;  %980 = vperm.xlu0 %2539, %v976_v11   ;;  %v307_v42 = vld [vmem:[#allocation2 + $0x238] sm:$0xff]  ;;  %v261_v11 = vld [vmem:[#allocation2 + $0xc8] sm:$0xff] }
  0x31   :  { %v2694_v44 = vld [vmem:[%s3353_s0 + $0x8] sm:$0x77]  ;;  %139 = vmatpush.msra.mxu1 %v53_v43  ;;  %v303_v43 = vld [vmem:[#allocation2 + $0x218] sm:$0xff] }
  0x32   :  { %v68_v45 = vld [vmem:[#allocation2 + $0x6c0] sm:$0xff]  ;;  %100 = vst [vmem:[#allocation1 + $0x10] ss:$2 sm:$0xff] %v2694_v44 }
  0x33   :  { %v84_v46 = vld [vmem:[#allocation2 + $0x8c0] sm:$0xff]  ;;  %160 = vmatpush.msra.mxu2 %v68_v45  ;;  %v299_v45 = vld [vmem:[#allocation2 + $0x1f8] sm:$0xff] }
  0x34   :  { %v36_v47 = vld [vmem:[#allocation2 + $0x2c0] sm:$0xff]  ;;  %180 = vmatpush.msra.mxu3 %v84_v46  ;;  %v295_v46 = vld [vmem:[#allocation2 + $0x1d8] sm:$0xff] }
  0x35   :  { %v52_v48 = vld [vmem:[#allocation2 + $0x4c0] sm:$0xff]  ;;  %120 = vmatpush.msra.mxu0 %v36_v47 }
  0x36   :  { %v67_v50 = vld [vmem:[#allocation2 + $0x6a0] sm:$0xff]  ;;  %140 = vmatpush.msra.mxu1 %v52_v48  ;;  %v291_v48 = vld [vmem:[#allocation2 + $0x1b8] sm:$0xff] }
  0x37   :  { %v83_v51 = vld [vmem:[#allocation2 + $0x8a0] sm:$0xff]  ;;  %161 = vmatpush.msra.mxu2 %v67_v50 }
  0x38   :  { %v35_v52 = vld [vmem:[#allocation2 + $0x2a0] sm:$0xff]  ;;  %181 = vmatpush.msra.mxu3 %v83_v51  ;;  %1337 = vperm.xlu0 %2539, %v1324_v12   ;;  %v285_v51 = vld [vmem:[#allocation2 + $0x188] sm:$0xff]  ;;  %v262_v12 = vld [vmem:[#allocation2 + $0xd0] sm:$0xff] }
  0x39   :  { %v51_v53 = vld [vmem:[#allocation2 + $0x4a0] sm:$0xff]  ;;  %121 = vmatpush.msra.mxu0 %v35_v52  ;;  %v103_v62 = vld.sshfl [vmem:[#allocation1 + $0x10] sm:$0xff pattern:$0x75316420]  ;;  %v286_v52 = vld [vmem:[#allocation2 + $0x190] sm:$0xff] }
  0x3a   :  { %v66_v54 = vld [vmem:[#allocation2 + $0x680] sm:$0xff]  ;;  %141 = vmatpush.msra.mxu1 %v51_v53  ;;  %v104_v63 = vld.sshfl [vmem:[#allocation1 + $0x18] sm:$0xff pattern:$0x75316420]  ;;  %v287_v53 = vld [vmem:[#allocation2 + $0x198] sm:$0xff] }
  0x3b   :  { %v82_v55 = vld [vmem:[#allocation2 + $0x880] sm:$0xff]  ;;  %162 = vmatpush.msra.mxu2 %v66_v54  ;;  %794 = vst [vmem:[#allocation1 + $0x10] ss:$2 sm:$0xff] %v2694_v44 }
  0x3c   :  { %v65_v56 = vld [vmem:[#allocation2 + $0x660] sm:$0xff]  ;;  %182 = vmatpush.msra.mxu3 %v82_v55  ;;  %v281_v55 = vld [vmem:[#allocation2 + $0x168] sm:$0xff] }
  0x3d   :  { %v34_v57 = vld [vmem:[#allocation2 + $0x280] sm:$0xff]  ;;  %163 = vmatpush.msra.mxu2 %v65_v56  ;;  %v282_v56 = vld [vmem:[#allocation2 + $0x170] sm:$0xff] }
  0x3e   :  { %v50_v58 = vld [vmem:[#allocation2 + $0x480] sm:$0xff]  ;;  %122 = vmatpush.msra.mxu0 %v34_v57  ;;  %v283_v57 = vld [vmem:[#allocation2 + $0x178] sm:$0xff] }
  0x3f   :  { %v81_v59 = vld [vmem:[#allocation2 + $0x860] sm:$0xff]  ;;  %142 = vmatpush.msra.mxu1 %v50_v58 }
  0x40   :  { %v33_v60 = vld [vmem:[#allocation2 + $0x260] sm:$0xff]  ;;  %183 = vmatpush.msra.mxu3 %v81_v59  ;;  %v277_v59 = vld [vmem:[#allocation2 + $0x148] sm:$0xff] }
  0x41   :  { %v49_v61 = vld [vmem:[#allocation2 + $0x460] sm:$0xff]  ;;  %123 = vmatpush.msra.mxu0 %v33_v60  ;;  %v278_v60 = vld [vmem:[#allocation2 + $0x150] sm:$0xff] }
  0x42   :  { %v64_v0 = vld [vmem:[#allocation2 + $0x640] sm:$0xff]  ;;  %143 = vmatpush.msra.mxu1 %v49_v61  ;;  %v279_v61 = vld [vmem:[#allocation2 + $0x158] sm:$0xff] }
  0x43   :  { %v80_v1 = vld [vmem:[#allocation2 + $0x840] sm:$0xff]  ;;  %164 = vmatpush.msra.mxu2 %v64_v0  ;;  %v274_v0 = vld [vmem:[#allocation2 + $0x130] sm:$0xff] }
  0x44   :  { %v102_v3 = vld.sshfl [vmem:[#allocation1 + $0x8] sm:$0xff pattern:$0x75316420]  ;;  %184 = vmatpush.msra.mxu3 %v80_v1  ;;  %165 = vmatmul.f32.vlgmr.msra.gmra.mxu2 %v103_v62  ;;  %v275_v1 = vld [vmem:[#allocation2 + $0x138] sm:$0xff] }
  0x45   :  { %v32_v4 = vld [vmem:[#allocation2 + $0x240] sm:$0xff]  ;;  %792 = vst [vmem:[#allocation1] ss:$2 sm:$0xff] %v2700_v49  ;;  %185 = vmatmul.f32.vlgmr.msra.gmra.mxu3 %v104_v63  ;;  %331 = vmatpush.msrb.mxu2 %v305_v19  ;;  %v273_v63 = vld [vmem:[#allocation2 + $0x128] sm:$0xff] }
  0x46   :  { %v48_v5 = vld [vmem:[#allocation2 + $0x440] sm:$0xff]  ;;  %124 = vmatpush.msra.mxu0 %v32_v4  ;;  %354 = vmatpush.msrb.mxu3 %v306_v20  ;;  %v270_v4 = vld [vmem:[#allocation2 + $0x110] sm:$0xff]  ;;  %v253_v19 = vld [vmem:[#allocation2 + $0x88] sm:$0xff] }
  0x47   :  { %144 = vmatpush.msra.mxu1 %v48_v5  ;;  %125 = vmatmul.f32.vlgmr.msra.gmra.mxu0 %v101_v2  ;;  %v1471_v13 = vld [vmem:[%s3355_s2 + $0x148] sm:$0x1]  ;;  %v271_v5 = vld [vmem:[#allocation2 + $0x118] sm:$0xff]  ;;  %v254_v20 = vld [vmem:[#allocation2 + $0x90] sm:$0xff] }
  0x48   :  { %145 = vmatmul.f32.vlgmr.msra.gmra.mxu1 %v102_v3  ;;  %v189_v14 = vld [vmem:[#allocation2] sm:$0x3f]  ;;  %1484 = vperm.xlu0 %2539, %v1471_v13   ;;  %v269_v3 = vld [vmem:[#allocation2 + $0x108] sm:$0xff]  ;;  %v263_v13 = vld [vmem:[#allocation2 + $0xd8] sm:$0xff] }
  0x49   :  { %v191_v15 = vrot.slane %v189_v14, 5  ;;  %v304_v18 = vld [vmem:[#allocation2 + $0x220] sm:$0xff]  ;;  %332 = vmatpush.msrb.mxu2 %v301_v22  ;;  %355 = vmatpush.msrb.mxu3 %v302_v23  ;;  %v249_v23 = vld [vmem:[#allocation2 + $0x68] sm:$0xff] }
  0x4a   :  { %308 = vmatpush.msrb.mxu1 %v304_v18  ;;  %v300_v21 = vld [vmem:[#allocation2 + $0x200] sm:$0xff] }
  0x4b   :  { %2392 = vmatpush.msk.msrb.mxu0 %vm216_vm0, %v191_v15  ;;  %v296_v26 = vld [vmem:[#allocation2 + $0x1e0] sm:$0xff]  ;;  %333 = vmatpush.msrb.mxu2 %v297_v27  ;;  %v245_v27 = vld [vmem:[#allocation2 + $0x48] sm:$0xff] }
  0x4c   :  { %309 = vmatpush.msrb.mxu1 %v300_v21  ;;  %v292_v30 = vld [vmem:[#allocation2 + $0x1c0] sm:$0xff]  ;;  %356 = vmatpush.msrb.mxu3 %v298_v29  ;;  %v255_v21 = vld [vmem:[#allocation2 + $0x98] sm:$0xff] }
  0x4d   :  { %v288_v33 = vld [vmem:[#allocation2 + $0x1a0] sm:$0xff]  ;;  %334 = vmatpush.msrb.mxu2 %v293_v31  ;;  %v247_v29 = vld [vmem:[#allocation2 + $0x58] sm:$0xff]  ;;  %v402_v31 = vld [vmem:[%s3355_s2 + $0x30] sm:$0xff] }
  0x4e   :  { %310 = vmatpush.msrb.mxu1 %v296_v26  ;;  %357 = vmatpush.msrb.mxu3 %v294_v32  ;;  %v196_v47 = vld [vmem:[%s3355_s2 + $0x8] sm:$0x7]  ;;  %v669_v32 = vld [vmem:[%s3355_s2 + $0x70] sm:$0xff] }
  0x4f   :  { %335 = vmatpush.msrb.mxu2 %v289_v34  ;;  %v284_v50 = vld [vmem:[#allocation2 + $0x180] sm:$0xff] }
  0x50   :  { %1642 = vperm.xlu0 %2539, %v1629_v16   ;;  %311 = vmatpush.msrb.mxu1 %v292_v30  ;;  %v280_v54 = vld [vmem:[#allocation2 + $0x160] sm:$0xff]  ;;  %v258_v16 = vld [vmem:[#allocation2 + $0xb0] sm:$0xff] }
  0x51   :  { %358 = vmatpush.msrb.mxu3 %v290_v37  ;;  %336 = vmatpush.msrb.mxu2 %v285_v51  ;;  %v276_v58 = vld [vmem:[#allocation2 + $0x140] sm:$0xff]  ;;  %v403_v30 = vld [vmem:[%s3355_s2 + $0x38] sm:$0x1f] }
  0x52   :  { %312 = vmatpush.msrb.mxu1 %v288_v33  ;;  %v272_v62 = vld [vmem:[#allocation2 + $0x120] sm:$0xff]  ;;  %411 = vperm.xlu1 %2540, %v403_v30   ;;  %v822_v37 = vld [vmem:[%s3355_s2 + $0x98] sm:$0xff] }
  0x53   :  { %359 = vmatpush.msrb.mxu3 %v286_v52  ;;  %337 = vmatpush.msrb.mxu2 %v281_v55  ;;  %v268_v2 = vld [vmem:[#allocation2 + $0x100] sm:$0xff]  ;;  %v400_v55 = vld [vmem:[%s3355_s2 + $0x20] sm:$0xff] }
  0x54   :  { %313 = vmatpush.msrb.mxu1 %v284_v50  ;;  %v264_v6 = vld [vmem:[#allocation2 + $0xe0] sm:$0xff]  ;;  %v1786_v50 = vld [vmem:[%s3355_s2 + $0x1a0] sm:$0xff] }
  0x55   :  { %360 = vmatpush.msrb.mxu3 %v282_v56  ;;  %338 = vmatpush.msrb.mxu2 %v277_v59  ;;  %v260_v10 = vld [vmem:[#allocation2 + $0xc0] sm:$0xff]  ;;  %v536_v59 = vld [vmem:[%s3355_s2 + $0x58] sm:$0xff] }
  0x56   :  { %314 = vmatpush.msrb.mxu1 %v280_v54  ;;  %v256_v14 = vld [vmem:[#allocation2 + $0xa0] sm:$0xff]  ;;  %544 = vperm.xlu2 %2541, %v536_v59  }
  0x57   :  { %361 = vmatpush.msrb.mxu3 %v278_v60  ;;  %339 = vmatpush.msrb.mxu2 %v273_v63  ;;  %v252_v18 = vld [vmem:[#allocation2 + $0x80] sm:$0xff]  ;;  %v535_v60 = vld [vmem:[%s3355_s2 + $0x50] sm:$0xff] }
  0x58   :  { %1790 = vperm.xlu0 %2539, %v1785_v17   ;;  %315 = vmatpush.msrb.mxu1 %v276_v58  ;;  %v259_v17 = vld [vmem:[#allocation2 + $0xb8] sm:$0xff]  ;;  %v248_v22 = vld [vmem:[#allocation2 + $0x60] sm:$0xff] }
  0x59   :  { %362 = vmatpush.msrb.mxu3 %v274_v0  ;;  %340 = vmatpush.msrb.mxu2 %v269_v3  ;;  %v244_v26 = vld [vmem:[#allocation2 + $0x40] sm:$0xff] }
  0x5a   :  { %316 = vmatpush.msrb.mxu1 %v272_v62  ;;  %406 = vperm.xlu1 %2540, %v402_v31   ;;  %v401_v58 = vld [vmem:[%s3355_s2 + $0x28] sm:$0x1f] }
  0x5b   :  { %363 = vmatpush.msrb.mxu3 %v270_v4  ;;  %341 = vmatpush.msrb.mxu2 %v265_v7  ;;  %v977_v63 = vld [vmem:[%s3355_s2 + $0xc8] sm:$0x1f] }
  0x5c   :  { %317 = vmatpush.msrb.mxu1 %v268_v2  ;;  %v1214_v2 = vld [vmem:[%s3355_s2 + $0xe8] sm:$0xff] }
  0x5d   :  { %364 = vmatpush.msrb.mxu3 %v266_v8  ;;  %342 = vmatpush.msrb.mxu2 %v261_v11  ;;  %v1627_v30 = vld [vmem:[%s3355_s2 + $0x168] sm:$0xff] }
  0x5e   :  { %318 = vmatpush.msrb.mxu1 %v264_v6  ;;  %539 = vperm.xlu2 %2541, %v535_v60   ;;  %v1787_v31 = vld [vmem:[%s3355_s2 + $0x1a8] sm:$0x3] }
  0x5f   :  { %365 = vmatpush.msrb.mxu3 %v262_v12 }
  0x60   :  { %319 = vmatpush.msrb.mxu1 %v260_v10 }
  0x61   :  { %366 = vmatpush.msrb.mxu3 %v258_v16  ;;  %v533_v16 = vld [vmem:[%s3355_s2 + $0x40] sm:$0xff] }
  0x62   :  { %320 = vmatpush.msrb.mxu1 %v256_v14  ;;  %673 = vperm.xlu1 %2540, %v669_v32  }
  0x63   :  { %367 = vmatpush.msrb.mxu3 %v254_v20 }
  0x64   :  { %321 = vmatpush.msrb.mxu1 %v252_v18 }
  0x66   :  { %322 = vmatpush.msrb.mxu1 %v248_v22  ;;  %v534_v22 = vld [vmem:[%s3355_s2 + $0x48] sm:$0xff] }
  0x68   :  { %323 = vmatpush.msrb.mxu1 %v244_v26  ;;  %v1469_v26 = vld [vmem:[%s3355_s2 + $0x138] sm:$0xff] }
  0x6a   :  { %827 = vperm.xlu1 %2540, %v822_v37  }
  0x82   :  { %v202_v33 = vpop.permute.xlu0 %201 }
  0xb0   :  { %v545_v32 = vpop.permute.xlu2 %544 }
  0xc4   :  { %v126_v24 = vpop.f32.mrf.mxu0  ;;  %v412_v62 = vpop.permute.xlu1 %411 }
  0xc5   :  { %v146_v25 = vpop.f32.mrf.mxu1 }
  0xc6   :  { %v147_v28 = vadd.f32 %v146_v25, %v126_v24  ;;  %v250_v24 = vld [vmem:[#allocation2 + $0x70] sm:$0xff]  ;;  %v251_v25 = vld [vmem:[#allocation2 + $0x78] sm:$0xff] }
  0xc7   :  { %v166_v35 = vpop.f32.mrf.mxu2  ;;  %368 = vmatpush.msrb.mxu3 %v250_v24 }
  0xc8   :  { %v186_v36 = vpop.f32.mrf.mxu3  ;;  %v167_v38 = vadd.f32 %v166_v35, %v147_v28  ;;  %v246_v28 = vld [vmem:[#allocation2 + $0x50] sm:$0xff] }
  0xc9   :  { %369 = vmatpush.msrb.mxu3 %v246_v28 }
  0xca   :  { %v187_v39 = vadd.f32 %v186_v36, %v167_v38  ;;  %v207_v38 = vpop.permute.xlu0 %206 }
  0xcc   :  { %v194_v41 = vsel %vm193_vm1, %v187_v39, %v191_v15  ;;  %v257_v15 = vld [vmem:[#allocation2 + $0xa8] sm:$0xff]  ;;  %v407_v3 = vpop.permute.xlu1 %406 }
  0xcd   :  { %234 = vmatpush.msrb.mxu0 %v194_v41  ;;  %343 = vmatpush.msrb.mxu2 %v257_v15 }
  0xce   :  { %2393 = vmatmul.msk.f32.vlgmr.msrb.gmra.mxu0 %vm209_vm2, %v195_v40 }
  0xcf   :  { %377 = vmatpush.msra.mxu0 %v307_v42  ;;  %344 = vmatpush.msrb.mxu2 %v253_v19  ;;  %v1108_v42 = vld [vmem:[%s3355_s2 + $0xd8] sm:$0xff] }
  0xd0   :  { %1111 = vperm.xlu1 %2540, %v1108_v42  }
  0xd1   :  { %378 = vmatpush.msra.mxu0 %v303_v43  ;;  %345 = vmatpush.msrb.mxu2 %v249_v23  ;;  %v1323_v43 = vld [vmem:[%s3355_s2 + $0x110] sm:$0xff] }
  0xd3   :  { %379 = vmatpush.msra.mxu0 %v299_v45  ;;  %346 = vmatpush.msrb.mxu2 %v245_v27  ;;  %v1470_v45 = vld [vmem:[%s3355_s2 + $0x140] sm:$0xff] }
  0xd5   :  { %380 = vmatpush.msra.mxu0 %v295_v46  ;;  %v1628_v46 = vld [vmem:[%s3355_s2 + $0x170] sm:$0xff] }
  0xd6   :  { %2394 = vmatmul.msk.f32.gmra.mxu0 %vm209_vm2, %v196_v47 }
  0xd7   :  { %381 = vmatpush.msra.mxu0 %v291_v48 }
  0xd8   :  { %1332 = vperm.xlu1 %2540, %v1323_v43  }
  0xd9   :  { %382 = vmatpush.msra.mxu0 %v287_v53 }
  0xdb   :  { %383 = vmatpush.msra.mxu0 %v283_v57 }
  0xdd   :  { %384 = vmatpush.msra.mxu0 %v279_v61  ;;  %v824_v61 = vld [vmem:[%s3355_s2 + $0xa8] sm:$0x7] }
  0xde   :  { %837 = vperm.xlu2 %2541, %v824_v61  }
  0xdf   :  { %385 = vmatpush.msra.mxu0 %v275_v1 }
  0xe0   :  { %1479 = vperm.xlu1 %2540, %v1470_v45  }
  0xe1   :  { %386 = vmatpush.msra.mxu0 %v271_v5 }
  0xe3   :  { %387 = vmatpush.msra.mxu0 %v267_v9 }
  0xe5   :  { %388 = vmatpush.msra.mxu0 %v263_v13 }
  0xe6   :  { %985 = vperm.xlu2 %2541, %v977_v63   ;;  %v791_v63 = vld [vmem:[#allocation2 + $0x38] sm:$0x3f] }
  0xe7   :  { %389 = vmatpush.msra.mxu0 %v259_v17  ;;  %v1322_v17 = vld [vmem:[%s3355_s2 + $0x108] sm:$0xff] }
  0xe8   :  { %1637 = vperm.xlu1 %2540, %v1628_v46  }
  0xe9   :  { %390 = vmatpush.msra.mxu0 %v255_v21 }
  0xeb   :  { %391 = vmatpush.msra.mxu0 %v251_v25 }
  0xed   :  { %392 = vmatpush.msra.mxu0 %v247_v29 }
  0xee   :  { %1217 = vperm.xlu2 %2541, %v1214_v2   ;;  %v795_v2 = vld.sshfl [vmem:[#allocation1] sm:$0xff pattern:$0x75316420] }
  0xf0   :  { %1795 = vperm.xlu1 %2540, %v1786_v50  }
  0xf6   :  { %1327 = vperm.xlu2 %2541, %v1322_v17   ;;  %v674_v17 = vpop.permute.xlu1 %673 }
  0xfe   :  { %1474 = vperm.xlu2 %2541, %v1469_v26  }
 0x106   :  { %1632 = vperm.xlu2 %2541, %v1627_v30   ;;  %v821_v30 = vld [vmem:[%s3355_s2 + $0x90] sm:$0x7] }
 0x10e   :  { %1800 = vperm.xlu2 %2541, %v1787_v31  }
 0x14b   :  { %v236_v34 = vpop.f32.mrf.mxu0 }
 0x14c   :  { %v237_v35 = vadd.f32 %v236_v34, %v202_v33 }
 0x14e   :  { %v242_v36 = vmax.f32 %v237_v35, 0.0  ;;  %v540_v35 = vpop.permute.xlu2 %539 }
 0x150   :  { %324 = vmatmul.f32.vlgmr.msrb.gmra.mxu1 %v242_v36  ;;  %347 = vmatmul.f32.vlgmr.msrb.gmra.mxu2 %v242_v36 }
 0x151   :  { %370 = vmatmul.f32.vlgmr.msrb.gmra.mxu3 %v242_v36  ;;  %393 = vmatmul.f32.vlgmr.msra.gmra.mxu0 %v242_v36 }
 0x153   :  { %v239_v39 = vpop.f32.mrf.mxu0 }
 0x154   :  { %v240_v40 = vadd.f32 %v239_v39, %v207_v38 }
 0x156   :  { %v243_v41 = vmax.f32 %v240_v40, 0.0 }
 0x158   :  { %327 = vmatmul.f32.gmra.mxu1 %v243_v41  ;;  %350 = vmatmul.f32.gmra.mxu2 %v243_v41 }
 0x159   :  { %373 = vmatmul.f32.gmra.mxu3 %v243_v41  ;;  %396 = vmatmul.f32.gmra.mxu0 %v243_v41 }
 0x1cd   :  { %v325_v47 = vpop.f32.mrf.mxu1 }
 0x1ce   :  { %v394_v48 = vpop.f32.mrf.mxu0 }
 0x1d3   :  { %v348_v51 = vpop.f32.mrf.mxu2 }
 0x1d4   :  { %v371_v52 = vpop.f32.mrf.mxu3 }
 0x1d5   :  { %v328_v53 = vpop.f32.mrf.mxu1 }
 0x1d6   :  { %v397_v54 = vpop.f32.mrf.mxu0  ;;  %2395 = vmatpush.msk.msra.mxu1 %vm193_vm1, %v328_v53 }
 0x1d7   :  { %2404 = vmatpush.msk.msrb.mxu0 %vm193_vm1, %v397_v54 }
 0x1d8   :  { %448 = vmatpush.msra.mxu1 %v325_v47  ;;  %v667_v47 = vld [vmem:[%s3355_s2 + $0x60] sm:$0xff] }
 0x1d9   :  { %517 = vmatpush.msrb.mxu0 %v394_v48  ;;  %2396 = vmatmul.msk.f32.vlgmr.msra.gmra.mxu1 %vm414_vm3, %v400_v55 }
 0x1da   :  { %2405 = vmatmul.msk.f32.vlgmr.msrb.gmra.mxu0 %vm414_vm3, %v400_v55 }
 0x1db   :  { %v351_v56 = vpop.f32.mrf.mxu2 }
 0x1dc   :  { %v374_v57 = vpop.f32.mrf.mxu3  ;;  %2398 = vmatpush.msk.msra.mxu2 %vm193_vm1, %v351_v56 }
 0x1dd   :  { %2401 = vmatpush.msk.msra.mxu3 %vm193_vm1, %v374_v57 }
 0x1de   :  { %471 = vmatpush.msra.mxu2 %v348_v51  ;;  %v668_v51 = vld [vmem:[%s3355_s2 + $0x68] sm:$0xff] }
 0x1df   :  { %494 = vmatpush.msra.mxu3 %v371_v52  ;;  %2399 = vmatmul.msk.f32.vlgmr.msra.gmra.mxu2 %vm414_vm3, %v400_v55 }
 0x1e0   :  { %2402 = vmatmul.msk.f32.vlgmr.msra.gmra.mxu3 %vm414_vm3, %v400_v55 }
 0x1e1   :  { %2397 = vmatmul.msk.f32.gmra.mxu1 %vm414_vm3, %v401_v58 }
 0x1e2   :  { %2406 = vmatmul.msk.f32.gmra.mxu0 %vm414_vm3, %v401_v58 }
 0x1e7   :  { %2400 = vmatmul.msk.f32.gmra.mxu2 %vm414_vm3, %v401_v58 }
 0x1e8   :  { %2403 = vmatmul.msk.f32.gmra.mxu3 %vm414_vm3, %v401_v58 }
 0x256   :  { %v450_v0 = vpop.f32.mrf.mxu1 }
 0x257   :  { %v519_v1 = vpop.f32.mrf.mxu0  ;;  %v451_v4 = vadd.f32 %v450_v0, %v407_v3 }
 0x258   :  { %v520_v5 = vadd.f32 %v519_v1, %v407_v3  ;;  %v2846_v1 = vrot.slane %v791_v63, 5  ;;  %v974_v63 = vld [vmem:[%s3355_s2 + $0xb0] sm:$0xff] }
 0x259   :  { %v525_v10 = vmax.f32 %v451_v4, 0.0 }
 0x25a   :  { %v528_v12 = vmax.f32 %v520_v5, 0.0 }
 0x25e   :  { %v453_v6 = vpop.f32.mrf.mxu1 }
 0x25f   :  { %v454_v7 = vadd.f32 %v453_v6, %v412_v62  ;;  %v522_v8 = vpop.f32.mrf.mxu0  ;;  %v789_v6 = vld [vmem:[#allocation2 + $0x28] sm:$0x3f] }
 0x260   :  { %v523_v9 = vadd.f32 %v522_v8, %v412_v62 }
 0x261   :  { %v529_v11 = vmax.f32 %v454_v7, 0.0  ;;  %v790_v7 = vld [vmem:[#allocation2 + $0x30] sm:$0x3f] }
 0x262   :  { %v532_v13 = vmax.f32 %v523_v9, 0.0  ;;  %v473_v14 = vpop.f32.mrf.mxu2  ;;  %v2856_v9 = vrot.slane %v789_v6, 5 }
 0x263   :  { %v496_v15 = vpop.f32.mrf.mxu3  ;;  %2407 = vmatpush.msk.msrb.mxu1 %vm554_vm4, %v529_v11  ;;  %v474_v19 = vadd.f32 %v473_v14, %v407_v3 }
 0x264   :  { %2416 = vmatpush.msk.msra.mxu0 %vm554_vm4, %v532_v13  ;;  %v497_v23 = vadd.f32 %v496_v15, %v407_v3  ;;  %v798_v3 = vld.sshfl [vmem:[#allocation1 + $0x18] sm:$0xff pattern:$0x75316420]  ;;  %v797_v13 = vld.sshfl [vmem:[#allocation1 + $0x10] sm:$0xff pattern:$0x75316420] }
 0x265   :  { %582 = vmatpush.msrb.mxu1 %v525_v10  ;;  %v526_v28 = vmax.f32 %v474_v19, 0.0  ;;  %v818_v5 = vsel %vm193_vm1, %v798_v3, %v2846_v1  ;;  %v2858_v10 = vrot.slane %v790_v7, 5  ;;  %1306 = vst [vmem:[#allocation1 + $0x10] ss:$2 sm:$0xff] %v2694_v44  ;;  %v820_v44 = vld [vmem:[%s3355_s2 + $0x88] sm:$0xff] }
 0x266   :  { %651 = vmatpush.msra.mxu0 %v528_v12  ;;  %2408 = vmatmul.msk.f32.vlgmr.msrb.gmra.mxu1 %vm547_vm5, %v533_v16  ;;  %v527_v29 = vmax.f32 %v497_v23, 0.0  ;;  %v796_v12 = vld.sshfl [vmem:[#allocation1 + $0x8] sm:$0xff pattern:$0x75316420] }
 0x267   :  { %2417 = vmatmul.msk.f32.vlgmr.msra.gmra.mxu0 %vm547_vm5, %v533_v16  ;;  %v816_v14 = vsel %vm193_vm1, %v796_v12, %v2856_v9  ;;  %1304 = vst [vmem:[#allocation1] ss:$2 sm:$0xff] %v2700_v49  ;;  %v817_v15 = vsel %vm193_vm1, %v797_v13, %v2858_v10  ;;  %v819_v49 = vld [vmem:[%s3355_s2 + $0x80] sm:$0xff] }
 0x26a   :  { %v476_v18 = vpop.f32.mrf.mxu2 }
 0x26b   :  { %v477_v20 = vadd.f32 %v476_v18, %v412_v62  ;;  %v499_v21 = vpop.f32.mrf.mxu3 }
 0x26c   :  { %v500_v24 = vadd.f32 %v499_v21, %v412_v62  ;;  %v788_v62 = vld [vmem:[#allocation2 + $0x20] sm:$0x3f] }
 0x26d   :  { %v530_v25 = vmax.f32 %v477_v20, 0.0  ;;  %v2844_v0 = vrot.slane %v788_v62, 5 }
 0x26e   :  { %v531_v27 = vmax.f32 %v500_v24, 0.0  ;;  %2409 = vmatmul.msk.f32.gmra.mxu1 %vm547_vm5, %v534_v22 }
 0x26f   :  { %2418 = vmatmul.msk.f32.gmra.mxu0 %vm547_vm5, %v534_v22  ;;  %2410 = vmatpush.msk.msrb.mxu2 %vm554_vm4, %v530_v25  ;;  %v815_v4 = vsel %vm193_vm1, %v795_v2, %v2844_v0 }
 0x270   :  { %2413 = vmatpush.msk.msrb.mxu3 %vm554_vm4, %v531_v27 }
 0x271   :  { %605 = vmatpush.msrb.mxu2 %v526_v28 }
 0x272   :  { %628 = vmatpush.msrb.mxu3 %v527_v29  ;;  %2411 = vmatmul.msk.f32.vlgmr.msrb.gmra.mxu2 %vm547_vm5, %v533_v16 }
 0x273   :  { %2414 = vmatmul.msk.f32.vlgmr.msrb.gmra.mxu3 %vm547_vm5, %v533_v16  ;;  %v679_v16 = vpop.permute.xlu0 %678 }
 0x27a   :  { %2412 = vmatmul.msk.f32.gmra.mxu2 %vm547_vm5, %v534_v22 }
 0x27b   :  { %2415 = vmatmul.msk.f32.gmra.mxu3 %vm547_vm5, %v534_v22 }
 0x2e3   :  { %v584_v33 = vpop.f32.mrf.mxu1 }
 0x2e4   :  { %v653_v34 = vpop.f32.mrf.mxu0  ;;  %v585_v36 = vadd.f32 %v584_v33, %v540_v35 }
 0x2e5   :  { %v654_v37 = vadd.f32 %v653_v34, %v540_v35 }
 0x2e6   :  { %v659_v42 = vmax.f32 %v585_v36, 0.0 }
 0x2e7   :  { %v662_v45 = vmax.f32 %v654_v37, 0.0 }
 0x2eb   :  { %v587_v38 = vpop.f32.mrf.mxu1 }
 0x2ec   :  { %v588_v39 = vadd.f32 %v587_v38, %v545_v32  ;;  %v656_v40 = vpop.f32.mrf.mxu0 }
 0x2ed   :  { %v657_v41 = vadd.f32 %v656_v40, %v545_v32 }
 0x2ee   :  { %v663_v43 = vmax.f32 %v588_v39, 0.0 }
 0x2ef   :  { %v666_v46 = vmax.f32 %v657_v41, 0.0 }
 0x2f0   :  { %702 = vmatpush.msra.mxu1 %v663_v43 }
 0x2f1   :  { %771 = vmatpush.msrb.mxu0 %v666_v46  ;;  %v833_v46 = vpop.permute.xlu0 %832 }
 0x2f2   :  { %703 = vmatpush.msra.mxu1 %v659_v42 }
 0x2f3   :  { %772 = vmatpush.msrb.mxu0 %v662_v45  ;;  %2419 = vmatmul.msk.f32.vlgmr.msra.gmra.mxu1 %vm681_vm6, %v667_v47 }
 0x2f4   :  { %2425 = vmatmul.msk.f32.vlgmr.msrb.gmra.mxu0 %vm681_vm6, %v667_v47  ;;  %2427 = vmatpush.msk.msrb.mxu1 %vm216_vm0, %v2844_v0 }
 0x2f5   :  { %v607_v48 = vpop.f32.mrf.mxu2  ;;  %2439 = vmatpush.msk.msra.mxu0 %vm216_vm0, %v2846_v1 }
 0x2f6   :  { %v630_v50 = vpop.f32.mrf.mxu3  ;;  %v608_v53 = vadd.f32 %v607_v48, %v540_v35  ;;  %871 = vmatpush.msrb.mxu1 %v815_v4 }
 0x2f7   :  { %v631_v56 = vadd.f32 %v630_v50, %v540_v35  ;;  %949 = vmatpush.msra.mxu0 %v818_v5  ;;  %v975_v5 = vld [vmem:[%s3355_s2 + $0xb8] sm:$0x1f] }
 0x2f8   :  { %v660_v60 = vmax.f32 %v608_v53, 0.0  ;;  %v828_v53 = vpop.permute.xlu1 %827 }
 0x2f9   :  { %v661_v61 = vmax.f32 %v631_v56, 0.0 }
 0x2fb   :  { %2420 = vmatmul.msk.f32.gmra.mxu1 %vm681_vm6, %v668_v51 }
 0x2fc   :  { %2426 = vmatmul.msk.f32.gmra.mxu0 %vm681_vm6, %v668_v51 }
 0x2fd   :  { %v610_v52 = vpop.f32.mrf.mxu2 }
 0x2fe   :  { %v611_v54 = vadd.f32 %v610_v52, %v545_v32  ;;  %v633_v55 = vpop.f32.mrf.mxu3 }
 0x2ff   :  { %v634_v57 = vadd.f32 %v633_v55, %v545_v32 }
 0x300   :  { %v664_v58 = vmax.f32 %v611_v54, 0.0 }
 0x301   :  { %v665_v59 = vmax.f32 %v634_v57, 0.0 }
 0x302   :  { %725 = vmatpush.msra.mxu2 %v664_v58 }
 0x303   :  { %748 = vmatpush.msra.mxu3 %v665_v59 }
 0x304   :  { %726 = vmatpush.msra.mxu2 %v660_v60 }
 0x305   :  { %749 = vmatpush.msra.mxu3 %v661_v61  ;;  %2421 = vmatmul.msk.f32.vlgmr.msra.gmra.mxu2 %vm681_vm6, %v667_v47 }
 0x306   :  { %2423 = vmatmul.msk.f32.vlgmr.msra.gmra.mxu3 %vm681_vm6, %v667_v47  ;;  %2431 = vmatpush.msk.msrb.mxu2 %vm216_vm0, %v2856_v9  ;;  %v838_v47 = vpop.permute.xlu2 %837 }
 0x307   :  { %2435 = vmatpush.msk.msrb.mxu3 %vm216_vm0, %v2858_v10 }
 0x308   :  { %897 = vmatpush.msrb.mxu2 %v816_v14 }
 0x309   :  { %923 = vmatpush.msrb.mxu3 %v817_v15 }
 0x30d   :  { %2422 = vmatmul.msk.f32.gmra.mxu2 %vm681_vm6, %v668_v51 }
 0x30e   :  { %2424 = vmatmul.msk.f32.gmra.mxu3 %vm681_vm6, %v668_v51  ;;  %vm2357_vm6 = vcmask 1043456  }
 0x370   :  { %v705_v8 = vpop.f32.mrf.mxu1 }
 0x371   :  { %v774_v11 = vpop.f32.mrf.mxu0  ;;  %v706_v19 = vadd.f32 %v705_v8, %v674_v17 }
 0x372   :  { %v775_v22 = vadd.f32 %v774_v11, %v674_v17 }
 0x373   :  { %v780_v26 = vmax.f32 %v706_v19, 0.0 }
 0x374   :  { %v783_v27 = vmax.f32 %v775_v22, 0.0 }
 0x378   :  { %v708_v18 = vpop.f32.mrf.mxu1 }
 0x379   :  { %v709_v20 = vadd.f32 %v708_v18, %v679_v16  ;;  %v777_v21 = vpop.f32.mrf.mxu0 }
 0x37a   :  { %v778_v23 = vadd.f32 %v777_v21, %v679_v16 }
 0x37b   :  { %v784_v24 = vmax.f32 %v709_v20, 0.0 }
 0x37c   :  { %v787_v25 = vmax.f32 %v778_v23, 0.0 }
 0x37d   :  { %872 = vmatpush.msrb.mxu1 %v784_v24 }
 0x37e   :  { %950 = vmatpush.msra.mxu0 %v787_v25 }
 0x37f   :  { %873 = vmatpush.msrb.mxu1 %v780_v26  ;;  %v981_v26 = vpop.permute.xlu0 %980 }
 0x380   :  { %951 = vmatpush.msra.mxu0 %v783_v27  ;;  %2428 = vmatmul.msk.f32.vlgmr.msrb.gmra.mxu1 %vm840_vm7, %v819_v49 }
 0x381   :  { %2440 = vmatmul.msk.f32.vlgmr.msra.gmra.mxu0 %vm840_vm7, %v819_v49 }
 0x388   :  { %v728_v28 = vpop.f32.mrf.mxu2  ;;  %2429 = vmatmul.msk.f32.gmra.mxu1 %vm840_vm7, %v820_v44 }
 0x389   :  { %v751_v29 = vpop.f32.mrf.mxu3  ;;  %2441 = vmatmul.msk.f32.gmra.mxu0 %vm840_vm7, %v820_v44  ;;  %v729_v32 = vadd.f32 %v728_v28, %v674_v17 }
 0x38a   :  { %v752_v35 = vadd.f32 %v751_v29, %v674_v17 }
 0x38b   :  { %v781_v39 = vmax.f32 %v729_v32, 0.0 }
 0x38c   :  { %v782_v40 = vmax.f32 %v752_v35, 0.0  ;;  %v1107_v35 = vld [vmem:[%s3355_s2 + $0xd0] sm:$0xff] }
 0x390   :  { %v731_v31 = vpop.f32.mrf.mxu2  ;;  %2430 = vmatmul.msk.f32.gmra.mxu1 %vm840_vm7, %v821_v30 }
 0x391   :  { %v732_v33 = vadd.f32 %v731_v31, %v679_v16  ;;  %v754_v34 = vpop.f32.mrf.mxu3  ;;  %2442 = vmatmul.msk.f32.gmra.mxu0 %vm840_vm7, %v821_v30 }
 0x392   :  { %v755_v36 = vadd.f32 %v754_v34, %v679_v16 }
 0x393   :  { %v785_v37 = vmax.f32 %v732_v33, 0.0 }
 0x394   :  { %v786_v38 = vmax.f32 %v755_v36, 0.0 }
 0x395   :  { %898 = vmatpush.msrb.mxu2 %v785_v37 }
 0x396   :  { %924 = vmatpush.msrb.mxu3 %v786_v38 }
 0x397   :  { %899 = vmatpush.msrb.mxu2 %v781_v39 }
 0x398   :  { %925 = vmatpush.msrb.mxu3 %v782_v40  ;;  %2432 = vmatmul.msk.f32.vlgmr.msrb.gmra.mxu2 %vm840_vm7, %v819_v49 }
 0x399   :  { %2436 = vmatmul.msk.f32.vlgmr.msrb.gmra.mxu3 %vm840_vm7, %v819_v49  ;;  %v986_v49 = vpop.permute.xlu2 %985 }
 0x3a0   :  { %2433 = vmatmul.msk.f32.gmra.mxu2 %vm840_vm7, %v820_v44 }
 0x3a1   :  { %2437 = vmatmul.msk.f32.gmra.mxu3 %vm840_vm7, %v820_v44 }
 0x3a8   :  { %2434 = vmatmul.msk.f32.gmra.mxu2 %vm840_vm7, %v821_v30 }
 0x3a9   :  { %2438 = vmatmul.msk.f32.gmra.mxu3 %vm840_vm7, %v821_v30 }
 0x3fd   :  { %v875_v41 = vpop.f32.mrf.mxu1 }
 0x3fe   :  { %v953_v42 = vpop.f32.mrf.mxu0  ;;  %v876_v56 = vadd.f32 %v875_v41, %v828_v53 }
 0x3ff   :  { %v954_v58 = vadd.f32 %v953_v42, %v828_v53 }
 0x400   :  { %v962_v62 = vmax.f32 %v876_v56, 0.0 }
 0x401   :  { %v965_v2 = vmax.f32 %v954_v58, 0.0 }
 0x405   :  { %v878_v43 = vpop.f32.mrf.mxu1 }
 0x406   :  { %v956_v45 = vpop.f32.mrf.mxu0  ;;  %v879_v50 = vadd.f32 %v878_v43, %v833_v46 }
 0x407   :  { %v957_v54 = vadd.f32 %v956_v45, %v833_v46 }
 0x408   :  { %v966_v60 = vmax.f32 %v879_v50, 0.0 }
 0x409   :  { %v969_v61 = vmax.f32 %v957_v54, 0.0 }
 0x40d   :  { %v881_v48 = vpop.f32.mrf.mxu1 }
 0x40e   :  { %v882_v51 = vadd.f32 %v881_v48, %v838_v47  ;;  %v959_v52 = vpop.f32.mrf.mxu0 }
 0x40f   :  { %v960_v55 = vadd.f32 %v959_v52, %v838_v47 }
 0x410   :  { %v970_v57 = vmax.f32 %v882_v51, 0.0  ;;  %v1112_v51 = vpop.permute.xlu1 %1111 }
 0x411   :  { %v973_v59 = vmax.f32 %v960_v55, 0.0 }
 0x412   :  { %2443 = vmatpush.msk.msra.mxu1 %vm193_vm1, %v970_v57  ;;  %v1213_v57 = vld [vmem:[%s3355_s2 + $0xe0] sm:$0xff] }
 0x413   :  { %2452 = vmatpush.msk.msrb.mxu0 %vm193_vm1, %v973_v59 }
 0x414   :  { %1021 = vmatpush.msra.mxu1 %v966_v60 }
 0x415   :  { %1090 = vmatpush.msrb.mxu0 %v969_v61 }
 0x416   :  { %1022 = vmatpush.msra.mxu1 %v962_v62 }
 0x417   :  { %1091 = vmatpush.msrb.mxu0 %v965_v2  ;;  %2444 = vmatmul.msk.f32.vlgmr.msra.gmra.mxu1 %vm988_vm8, %v974_v63 }
 0x418   :  { %2453 = vmatmul.msk.f32.vlgmr.msrb.gmra.mxu0 %vm988_vm8, %v974_v63 }
 0x41b   :  { %v901_v3 = vpop.f32.mrf.mxu2 }
 0x41c   :  { %v927_v4 = vpop.f32.mrf.mxu3  ;;  %v902_v16 = vadd.f32 %v901_v3, %v828_v53  ;;  %v1307_v3 = vld.sshfl [vmem:[#allocation1] sm:$0xff pattern:$0x75316420] }
 0x41d   :  { %v928_v18 = vadd.f32 %v927_v4, %v828_v53  ;;  %v1310_v4 = vld.sshfl [vmem:[#allocation1 + $0x18] sm:$0xff pattern:$0x75316420] }
 0x41e   :  { %v963_v22 = vmax.f32 %v902_v16, 0.0  ;;  %v1321_v16 = vld [vmem:[%s3355_s2 + $0x100] sm:$0x1] }
 0x41f   :  { %2445 = vmatmul.msk.f32.gmra.mxu1 %vm988_vm8, %v975_v5  ;;  %v964_v23 = vmax.f32 %v928_v18, 0.0 }
 0x420   :  { %2454 = vmatmul.msk.f32.gmra.mxu0 %vm988_vm8, %v975_v5 }
 0x423   :  { %v904_v6 = vpop.f32.mrf.mxu2 }
 0x424   :  { %v930_v7 = vpop.f32.mrf.mxu3  ;;  %v905_v11 = vadd.f32 %v904_v6, %v833_v46  ;;  %v1318_v6 = vsel %vm193_vm1, %v1310_v4, %v2846_v1 }
 0x425   :  { %v931_v14 = vadd.f32 %v930_v7, %v833_v46  ;;  %v1218_v7 = vpop.permute.xlu2 %1217 }
 0x426   :  { %v967_v20 = vmax.f32 %v905_v11, 0.0 }
 0x427   :  { %v968_v21 = vmax.f32 %v931_v14, 0.0 }
 0x42b   :  { %v907_v8 = vpop.f32.mrf.mxu2 }
 0x42c   :  { %v908_v12 = vadd.f32 %v907_v8, %v838_v47  ;;  %v933_v13 = vpop.f32.mrf.mxu3 }
 0x42d   :  { %v934_v15 = vadd.f32 %v933_v13, %v838_v47  ;;  %v1319_v13 = vld [vmem:[%s3355_s2 + $0xf0] sm:$0xff] }
 0x42e   :  { %v971_v17 = vmax.f32 %v908_v12, 0.0 }
 0x42f   :  { %v972_v19 = vmax.f32 %v934_v15, 0.0  ;;  %v1309_v15 = vld.sshfl [vmem:[#allocation1 + $0x10] sm:$0xff pattern:$0x75316420] }
 0x430   :  { %2446 = vmatpush.msk.msra.mxu2 %vm193_vm1, %v971_v17  ;;  %v1317_v18 = vsel %vm193_vm1, %v1309_v15, %v2858_v10 }
 0x431   :  { %2449 = vmatpush.msk.msra.mxu3 %vm193_vm1, %v972_v19 }
 0x432   :  { %1044 = vmatpush.msra.mxu2 %v967_v20 }
 0x433   :  { %1067 = vmatpush.msra.mxu3 %v968_v21 }
 0x434   :  { %1045 = vmatpush.msra.mxu2 %v963_v22 }
 0x435   :  { %1068 = vmatpush.msra.mxu3 %v964_v23  ;;  %2447 = vmatmul.msk.f32.vlgmr.msra.gmra.mxu2 %vm988_vm8, %v974_v63 }
 0x436   :  { %2450 = vmatmul.msk.f32.vlgmr.msra.gmra.mxu3 %vm988_vm8, %v974_v63 }
 0x43d   :  { %2448 = vmatmul.msk.f32.gmra.mxu2 %vm988_vm8, %v975_v5 }
 0x43e   :  { %2451 = vmatmul.msk.f32.gmra.mxu3 %vm988_vm8, %v975_v5  ;;  %v1315_v5 = vsel %vm193_vm1, %v1307_v3, %v2844_v0  ;;  %vm2362_vm8 = vcmask 1045504  }
 0x494   :  { %v1024_v24 = vpop.f32.mrf.mxu1 }
 0x495   :  { %v1093_v25 = vpop.f32.mrf.mxu0  ;;  %v1025_v44 = vadd.f32 %v1024_v24, %v981_v26 }
 0x496   :  { %v1094_v30 = vadd.f32 %v1093_v25, %v981_v26  ;;  %v1338_v25 = vpop.permute.xlu0 %1337 }
 0x497   :  { %v1099_v34 = vmax.f32 %v1025_v44, 0.0 }
 0x498   :  { %v1102_v36 = vmax.f32 %v1094_v30, 0.0 }
 0x49c   :  { %v1027_v27 = vpop.f32.mrf.mxu1 }
 0x49d   :  { %v1028_v28 = vadd.f32 %v1027_v27, %v986_v49  ;;  %v1096_v29 = vpop.f32.mrf.mxu0 }
 0x49e   :  { %v1097_v31 = vadd.f32 %v1096_v29, %v986_v49  ;;  %v1328_v29 = vpop.permute.xlu2 %1327 }
 0x49f   :  { %v1103_v32 = vmax.f32 %v1028_v28, 0.0 }
 0x4a0   :  { %v1106_v33 = vmax.f32 %v1097_v31, 0.0 }
 0x4a1   :  { %2455 = vmatpush.msk.msrb.mxu1 %vm554_vm4, %v1103_v32 }
 0x4a2   :  { %2461 = vmatpush.msk.msra.mxu0 %vm554_vm4, %v1106_v33 }
 0x4a3   :  { %1144 = vmatpush.msrb.mxu1 %v1099_v34 }
 0x4a4   :  { %1204 = vmatpush.msra.mxu0 %v1102_v36  ;;  %2456 = vmatmul.msk.f32.vlgmr.msrb.gmra.mxu1 %vm547_vm5, %v1107_v35 }
 0x4a5   :  { %2462 = vmatmul.msk.f32.vlgmr.msra.gmra.mxu0 %vm547_vm5, %v1107_v35 }
 0x4b8   :  { %v1047_v37 = vpop.f32.mrf.mxu2 }
 0x4b9   :  { %v1070_v38 = vpop.f32.mrf.mxu3  ;;  %v1048_v40 = vadd.f32 %v1047_v37, %v981_v26 }
 0x4ba   :  { %v1071_v43 = vadd.f32 %v1070_v38, %v981_v26  ;;  %v1333_v26 = vpop.permute.xlu1 %1332 }
 0x4bb   :  { %v1100_v48 = vmax.f32 %v1048_v40, 0.0 }
 0x4bc   :  { %v1101_v50 = vmax.f32 %v1071_v43, 0.0 }
 0x4c0   :  { %v1050_v39 = vpop.f32.mrf.mxu2 }
 0x4c1   :  { %v1051_v41 = vadd.f32 %v1050_v39, %v986_v49  ;;  %v1073_v42 = vpop.f32.mrf.mxu3  ;;  %v1466_v39 = vld [vmem:[%s3355_s2 + $0x120] sm:$0xff] }
 0x4c2   :  { %v1074_v45 = vadd.f32 %v1073_v42, %v986_v49  ;;  %v1468_v42 = vld [vmem:[%s3355_s2 + $0x130] sm:$0x1] }
 0x4c3   :  { %v1104_v46 = vmax.f32 %v1051_v41, 0.0  ;;  %v1467_v41 = vld [vmem:[%s3355_s2 + $0x128] sm:$0xff] }
 0x4c4   :  { %v1105_v47 = vmax.f32 %v1074_v45, 0.0 }
 0x4c5   :  { %2457 = vmatpush.msk.msrb.mxu2 %vm554_vm4, %v1104_v46 }
 0x4c6   :  { %2459 = vmatpush.msk.msrb.mxu3 %vm554_vm4, %v1105_v47 }
 0x4c7   :  { %1164 = vmatpush.msrb.mxu2 %v1100_v48 }
 0x4c8   :  { %1184 = vmatpush.msrb.mxu3 %v1101_v50  ;;  %2458 = vmatmul.msk.f32.vlgmr.msrb.gmra.mxu2 %vm547_vm5, %v1107_v35 }
 0x4c9   :  { %2460 = vmatmul.msk.f32.vlgmr.msrb.gmra.mxu3 %vm547_vm5, %v1107_v35 }
 0x521   :  { %v1146_v52 = vpop.f32.mrf.mxu1 }
 0x522   :  { %v1147_v53 = vadd.f32 %v1146_v52, %v1112_v51  ;;  %v1206_v54 = vpop.f32.mrf.mxu0 }
 0x523   :  { %v1207_v55 = vadd.f32 %v1206_v54, %v1112_v51 }
 0x524   :  { %v1209_v56 = vmax.f32 %v1147_v53, 0.0 }
 0x525   :  { %v1212_v58 = vmax.f32 %v1207_v55, 0.0 }
 0x526   :  { %1239 = vmatpush.msra.mxu1 %v1209_v56 }
 0x527   :  { %1299 = vmatpush.msrb.mxu0 %v1212_v58  ;;  %2463 = vmatmul.msk.f32.vlgmr.msra.gmra.mxu1 %vm1220_vm9, %v1213_v57 }
 0x528   :  { %2466 = vmatmul.msk.f32.vlgmr.msrb.gmra.mxu0 %vm1220_vm9, %v1213_v57  ;;  %2467 = vmatpush.msk.msrb.mxu1 %vm216_vm0, %v2844_v0  ;;  %v1320_v0 = vld [vmem:[%s3355_s2 + $0xf8] sm:$0xff] }
 0x529   :  { %2479 = vmatpush.msk.msra.mxu0 %vm216_vm0, %v2846_v1  ;;  %v1308_v1 = vld.sshfl [vmem:[#allocation1 + $0x8] sm:$0xff pattern:$0x75316420] }
 0x52a   :  { %1364 = vmatpush.msrb.mxu1 %v1315_v5  ;;  %v1316_v17 = vsel %vm193_vm1, %v1308_v1, %v2856_v9  ;;  %v1485_v5 = vpop.permute.xlu0 %1484 }
 0x52b   :  { %1442 = vmatpush.msra.mxu0 %v1318_v6  ;;  %v1480_v6 = vpop.permute.xlu1 %1479 }
 0x54b   :  { %v1166_v59 = vpop.f32.mrf.mxu2 }
 0x54c   :  { %v1167_v60 = vadd.f32 %v1166_v59, %v1112_v51  ;;  %v1186_v61 = vpop.f32.mrf.mxu3 }
 0x54d   :  { %v1187_v62 = vadd.f32 %v1186_v61, %v1112_v51 }
 0x54e   :  { %v1210_v63 = vmax.f32 %v1167_v60, 0.0 }
 0x54f   :  { %v1211_v2 = vmax.f32 %v1187_v62, 0.0 }
 0x550   :  { %1259 = vmatpush.msra.mxu2 %v1210_v63 }
 0x551   :  { %1279 = vmatpush.msra.mxu3 %v1211_v2  ;;  %2464 = vmatmul.msk.f32.vlgmr.msra.gmra.mxu2 %vm1220_vm9, %v1213_v57 }
 0x552   :  { %2465 = vmatmul.msk.f32.vlgmr.msra.gmra.mxu3 %vm1220_vm9, %v1213_v57  ;;  %2471 = vmatpush.msk.msrb.mxu2 %vm216_vm0, %v2856_v9 }
 0x553   :  { %2475 = vmatpush.msk.msrb.mxu3 %vm216_vm0, %v2858_v10 }
 0x554   :  { %1390 = vmatpush.msrb.mxu2 %v1316_v17 }
 0x555   :  { %1416 = vmatpush.msrb.mxu3 %v1317_v18 }
 0x5a4   :  { %v1241_v8 = vpop.f32.mrf.mxu1 }
 0x5a5   :  { %v1242_v11 = vadd.f32 %v1241_v8, %v1218_v7  ;;  %v1301_v12 = vpop.f32.mrf.mxu0 }
 0x5a6   :  { %v1302_v14 = vadd.f32 %v1301_v12, %v1218_v7 }
 0x5a7   :  { %1365 = vmatpush.msrb.mxu1 %v1242_v11 }
 0x5a8   :  { %1443 = vmatpush.msra.mxu0 %v1302_v14  ;;  %2468 = vmatmul.msk.f32.vlgmr.msrb.gmra.mxu1 %vm1340_vm10, %v1319_v13 }
 0x5a9   :  { %2480 = vmatmul.msk.f32.vlgmr.msra.gmra.mxu0 %vm1340_vm10, %v1319_v13 }
 0x5b0   :  { %2469 = vmatmul.msk.f32.gmra.mxu1 %vm1340_vm10, %v1320_v0 }
 0x5b1   :  { %2481 = vmatmul.msk.f32.gmra.mxu0 %vm1340_vm10, %v1320_v0 }
 0x5b8   :  { %2470 = vmatmul.msk.f32.gmra.mxu1 %vm1340_vm10, %v1321_v16 }
 0x5b9   :  { %2482 = vmatmul.msk.f32.gmra.mxu0 %vm1340_vm10, %v1321_v16 }
 0x5d4   :  { %v1261_v19 = vpop.f32.mrf.mxu2 }
 0x5d5   :  { %v1262_v20 = vadd.f32 %v1261_v19, %v1218_v7  ;;  %v1281_v21 = vpop.f32.mrf.mxu3 }
 0x5d6   :  { %v1282_v22 = vadd.f32 %v1281_v21, %v1218_v7  ;;  %v1624_v21 = vld [vmem:[%s3355_s2 + $0x150] sm:$0xff] }
 0x5d7   :  { %1391 = vmatpush.msrb.mxu2 %v1262_v20 }
 0x5d8   :  { %1417 = vmatpush.msrb.mxu3 %v1282_v22  ;;  %2472 = vmatmul.msk.f32.vlgmr.msrb.gmra.mxu2 %vm1340_vm10, %v1319_v13 }
 0x5d9   :  { %2476 = vmatmul.msk.f32.vlgmr.msrb.gmra.mxu3 %vm1340_vm10, %v1319_v13  ;;  %v1475_v13 = vpop.permute.xlu2 %1474 }
 0x5e0   :  { %2473 = vmatmul.msk.f32.gmra.mxu2 %vm1340_vm10, %v1320_v0 }
 0x5e1   :  { %2477 = vmatmul.msk.f32.gmra.mxu3 %vm1340_vm10, %v1320_v0 }
 0x5e8   :  { %2474 = vmatmul.msk.f32.gmra.mxu2 %vm1340_vm10, %v1321_v16 }
 0x5e9   :  { %2478 = vmatmul.msk.f32.gmra.mxu3 %vm1340_vm10, %v1321_v16 }
 0x625   :  { %v1367_v9 = vpop.f32.mrf.mxu1 }
 0x626   :  { %v1445_v10 = vpop.f32.mrf.mxu0  ;;  %v1368_v32 = vadd.f32 %v1367_v9, %v1328_v29  ;;  %v1625_v9 = vld [vmem:[%s3355_s2 + $0x158] sm:$0xff] }
 0x627   :  { %v1446_v34 = vadd.f32 %v1445_v10, %v1328_v29  ;;  %v1626_v10 = vld [vmem:[%s3355_s2 + $0x160] sm:$0x3] }
 0x628   :  { %v1454_v38 = vmax.f32 %v1368_v32, 0.0 }
 0x629   :  { %v1457_v40 = vmax.f32 %v1446_v34, 0.0 }
 0x62d   :  { %v1370_v23 = vpop.f32.mrf.mxu1 }
 0x62e   :  { %v1448_v24 = vpop.f32.mrf.mxu0  ;;  %v1371_v27 = vadd.f32 %v1370_v23, %v1333_v26 }
 0x62f   :  { %v1449_v30 = vadd.f32 %v1448_v24, %v1333_v26 }
 0x630   :  { %v1458_v36 = vmax.f32 %v1371_v27, 0.0 }
 0x631   :  { %v1461_v37 = vmax.f32 %v1449_v30, 0.0 }
 0x635   :  { %v1373_v49 = vpop.f32.mrf.mxu1 }
 0x636   :  { %v1374_v44 = vadd.f32 %v1373_v49, %v1338_v25  ;;  %v1451_v28 = vpop.f32.mrf.mxu0 }
 0x637   :  { %v1452_v31 = vadd.f32 %v1451_v28, %v1338_v25 }
 0x638   :  { %v1462_v33 = vmax.f32 %v1374_v44, 0.0 }
 0x639   :  { %v1465_v35 = vmax.f32 %v1452_v31, 0.0 }
 0x63a   :  { %2483 = vmatpush.msk.msra.mxu1 %vm216_vm0, %v1462_v33 }
 0x63b   :  { %2495 = vmatpush.msk.msrb.mxu0 %vm216_vm0, %v1465_v35 }
 0x63c   :  { %1522 = vmatpush.msra.mxu1 %v1458_v36 }
 0x63d   :  { %1600 = vmatpush.msrb.mxu0 %v1461_v37 }
 0x63e   :  { %1523 = vmatpush.msra.mxu1 %v1454_v38 }
 0x63f   :  { %1601 = vmatpush.msrb.mxu0 %v1457_v40  ;;  %2484 = vmatmul.msk.f32.vlgmr.msra.gmra.mxu1 %vm1340_vm10, %v1466_v39 }
 0x640   :  { %2496 = vmatmul.msk.f32.vlgmr.msrb.gmra.mxu0 %vm1340_vm10, %v1466_v39 }
 0x647   :  { %2485 = vmatmul.msk.f32.gmra.mxu1 %vm1340_vm10, %v1467_v41 }
 0x648   :  { %2497 = vmatmul.msk.f32.gmra.mxu0 %vm1340_vm10, %v1467_v41 }
 0x64f   :  { %2486 = vmatmul.msk.f32.gmra.mxu1 %vm1340_vm10, %v1468_v42 }
 0x650   :  { %2498 = vmatmul.msk.f32.gmra.mxu0 %vm1340_vm10, %v1468_v42 }
 0x65b   :  { %v1393_v43 = vpop.f32.mrf.mxu2 }
 0x65c   :  { %v1419_v45 = vpop.f32.mrf.mxu3  ;;  %v1394_v55 = vadd.f32 %v1393_v43, %v1328_v29  ;;  %v1643_v43 = vpop.permute.xlu0 %1642 }
 0x65d   :  { %v1420_v57 = vadd.f32 %v1419_v45, %v1328_v29  ;;  %v1638_v45 = vpop.permute.xlu1 %1637 }
 0x65e   :  { %v1455_v61 = vmax.f32 %v1394_v55, 0.0 }
 0x65f   :  { %v1456_v62 = vmax.f32 %v1420_v57, 0.0 }
 0x663   :  { %v1396_v46 = vpop.f32.mrf.mxu2 }
 0x664   :  { %v1422_v47 = vpop.f32.mrf.mxu3  ;;  %v1397_v50 = vadd.f32 %v1396_v46, %v1333_v26 }
 0x665   :  { %v1423_v53 = vadd.f32 %v1422_v47, %v1333_v26 }
 0x666   :  { %v1459_v59 = vmax.f32 %v1397_v50, 0.0 }
 0x667   :  { %v1460_v60 = vmax.f32 %v1423_v53, 0.0 }
 0x66b   :  { %v1399_v48 = vpop.f32.mrf.mxu2 }
 0x66c   :  { %v1400_v51 = vadd.f32 %v1399_v48, %v1338_v25  ;;  %v1425_v52 = vpop.f32.mrf.mxu3 }
 0x66d   :  { %v1426_v54 = vadd.f32 %v1425_v52, %v1338_v25 }
 0x66e   :  { %v1463_v56 = vmax.f32 %v1400_v51, 0.0  ;;  %v1633_v51 = vpop.permute.xlu2 %1632 }
 0x66f   :  { %v1464_v58 = vmax.f32 %v1426_v54, 0.0 }
 0x670   :  { %2487 = vmatpush.msk.msra.mxu2 %vm216_vm0, %v1463_v56 }
 0x671   :  { %2491 = vmatpush.msk.msra.mxu3 %vm216_vm0, %v1464_v58 }
 0x672   :  { %1548 = vmatpush.msra.mxu2 %v1459_v59 }
 0x673   :  { %1574 = vmatpush.msra.mxu3 %v1460_v60 }
 0x674   :  { %1549 = vmatpush.msra.mxu2 %v1455_v61  ;;  %v1782_v61 = vld [vmem:[%s3355_s2 + $0x180] sm:$0xff] }
 0x675   :  { %1575 = vmatpush.msra.mxu3 %v1456_v62  ;;  %2488 = vmatmul.msk.f32.vlgmr.msra.gmra.mxu2 %vm1340_vm10, %v1466_v39 }
 0x676   :  { %2492 = vmatmul.msk.f32.vlgmr.msra.gmra.mxu3 %vm1340_vm10, %v1466_v39 }
 0x67d   :  { %2489 = vmatmul.msk.f32.gmra.mxu2 %vm1340_vm10, %v1467_v41 }
 0x67e   :  { %2493 = vmatmul.msk.f32.gmra.mxu3 %vm1340_vm10, %v1467_v41 }
 0x685   :  { %2490 = vmatmul.msk.f32.gmra.mxu2 %vm1340_vm10, %v1468_v42 }
 0x686   :  { %2494 = vmatmul.msk.f32.gmra.mxu3 %vm1340_vm10, %v1468_v42 }
 0x6bc   :  { %v1525_v63 = vpop.f32.mrf.mxu1 }
 0x6bd   :  { %v1603_v2 = vpop.f32.mrf.mxu0  ;;  %v1526_v1 = vadd.f32 %v1525_v63, %v1475_v13  ;;  %v1783_v63 = vld [vmem:[%s3355_s2 + $0x188] sm:$0xff] }
 0x6be   :  { %v1604_v16 = vadd.f32 %v1603_v2, %v1475_v13  ;;  %v1784_v2 = vld [vmem:[%s3355_s2 + $0x190] sm:$0x3] }
 0x6bf   :  { %v1612_v20 = vmax.f32 %v1526_v1, 0.0 }
 0x6c0   :  { %v1615_v22 = vmax.f32 %v1604_v16, 0.0 }
 0x6c4   :  { %v1528_v3 = vpop.f32.mrf.mxu1 }
 0x6c5   :  { %v1606_v4 = vpop.f32.mrf.mxu0  ;;  %v1529_v8 = vadd.f32 %v1528_v3, %v1480_v6 }
 0x6c6   :  { %v1607_v14 = vadd.f32 %v1606_v4, %v1480_v6 }
 0x6c7   :  { %v1616_v18 = vmax.f32 %v1529_v8, 0.0 }
 0x6c8   :  { %v1619_v19 = vmax.f32 %v1607_v14, 0.0 }
 0x6cc   :  { %v1531_v7 = vpop.f32.mrf.mxu1 }
 0x6cd   :  { %v1532_v11 = vadd.f32 %v1531_v7, %v1485_v5  ;;  %v1609_v12 = vpop.f32.mrf.mxu0 }
 0x6ce   :  { %v1610_v0 = vadd.f32 %v1609_v12, %v1485_v5 }
 0x6cf   :  { %v1620_v15 = vmax.f32 %v1532_v11, 0.0 }
 0x6d0   :  { %v1623_v17 = vmax.f32 %v1610_v0, 0.0 }
 0x6d1   :  { %2499 = vmatpush.msk.msrb.mxu1 %vm216_vm0, %v1620_v15 }
 0x6d2   :  { %2511 = vmatpush.msk.msra.mxu0 %vm216_vm0, %v1623_v17 }
 0x6d3   :  { %1680 = vmatpush.msrb.mxu1 %v1616_v18 }
 0x6d4   :  { %1758 = vmatpush.msra.mxu0 %v1619_v19 }
 0x6d5   :  { %1681 = vmatpush.msrb.mxu1 %v1612_v20 }
 0x6d6   :  { %1759 = vmatpush.msra.mxu0 %v1615_v22  ;;  %2500 = vmatmul.msk.f32.vlgmr.msrb.gmra.mxu1 %vm1340_vm10, %v1624_v21 }
 0x6d7   :  { %2512 = vmatmul.msk.f32.vlgmr.msra.gmra.mxu0 %vm1340_vm10, %v1624_v21 }
 0x6de   :  { %2501 = vmatmul.msk.f32.gmra.mxu1 %vm1340_vm10, %v1625_v9 }
 0x6df   :  { %2513 = vmatmul.msk.f32.gmra.mxu0 %vm1340_vm10, %v1625_v9 }
 0x6e6   :  { %2502 = vmatmul.msk.f32.gmra.mxu1 %vm1340_vm10, %v1626_v10 }
 0x6e7   :  { %2514 = vmatmul.msk.f32.gmra.mxu0 %vm1340_vm10, %v1626_v10 }
 0x6f8   :  { %v1551_v23 = vpop.f32.mrf.mxu2 }
 0x6f9   :  { %v1577_v24 = vpop.f32.mrf.mxu3  ;;  %v1552_v31 = vadd.f32 %v1551_v23, %v1475_v13 }
 0x6fa   :  { %v1578_v33 = vadd.f32 %v1577_v24, %v1475_v13 }
 0x6fb   :  { %v1613_v37 = vmax.f32 %v1552_v31, 0.0 }
 0x6fc   :  { %v1614_v38 = vmax.f32 %v1578_v33, 0.0 }
 0x700   :  { %v1554_v25 = vpop.f32.mrf.mxu2 }
 0x701   :  { %v1580_v26 = vpop.f32.mrf.mxu3  ;;  %v1555_v27 = vadd.f32 %v1554_v25, %v1480_v6 }
 0x702   :  { %v1581_v29 = vadd.f32 %v1580_v26, %v1480_v6 }
 0x703   :  { %v1617_v35 = vmax.f32 %v1555_v27, 0.0 }
 0x704   :  { %v1618_v36 = vmax.f32 %v1581_v29, 0.0 }
 0x708   :  { %v1557_v49 = vpop.f32.mrf.mxu2 }
 0x709   :  { %v1558_v44 = vadd.f32 %v1557_v49, %v1485_v5  ;;  %v1583_v28 = vpop.f32.mrf.mxu3 }
 0x70a   :  { %v1584_v30 = vadd.f32 %v1583_v28, %v1485_v5 }
 0x70b   :  { %v1621_v32 = vmax.f32 %v1558_v44, 0.0 }
 0x70c   :  { %v1622_v34 = vmax.f32 %v1584_v30, 0.0 }
 0x70d   :  { %2503 = vmatpush.msk.msrb.mxu2 %vm216_vm0, %v1621_v32 }
 0x70e   :  { %2507 = vmatpush.msk.msrb.mxu3 %vm216_vm0, %v1622_v34 }
 0x70f   :  { %1706 = vmatpush.msrb.mxu2 %v1617_v35  ;;  %v3052_v35 = vpop.permute.xlu1 %1795 }
 0x710   :  { %1732 = vmatpush.msrb.mxu3 %v1618_v36 }
 0x711   :  { %1707 = vmatpush.msrb.mxu2 %v1613_v37 }
 0x712   :  { %1733 = vmatpush.msrb.mxu3 %v1614_v38  ;;  %2504 = vmatmul.msk.f32.vlgmr.msrb.gmra.mxu2 %vm1340_vm10, %v1624_v21 }
 0x713   :  { %2508 = vmatmul.msk.f32.vlgmr.msrb.gmra.mxu3 %vm1340_vm10, %v1624_v21  ;;  %v3039_v21 = vpop.permute.xlu0 %1790 }
 0x71a   :  { %2505 = vmatmul.msk.f32.gmra.mxu2 %vm1340_vm10, %v1625_v9 }
 0x71b   :  { %2509 = vmatmul.msk.f32.gmra.mxu3 %vm1340_vm10, %v1625_v9 }
 0x722   :  { %2506 = vmatmul.msk.f32.gmra.mxu2 %vm1340_vm10, %v1626_v10 }
 0x723   :  { %2510 = vmatmul.msk.f32.gmra.mxu3 %vm1340_vm10, %v1626_v10 }
 0x753   :  { %v1683_v39 = vpop.f32.mrf.mxu1 }
 0x754   :  { %v1761_v40 = vpop.f32.mrf.mxu0  ;;  %v1684_v54 = vadd.f32 %v1683_v39, %v1633_v51 }
 0x755   :  { %v1762_v56 = vadd.f32 %v1761_v40, %v1633_v51 }
 0x756   :  { %v1770_v60 = vmax.f32 %v1684_v54, 0.0 }
 0x757   :  { %v1773_v62 = vmax.f32 %v1762_v56, 0.0 }
 0x75b   :  { %v1686_v41 = vpop.f32.mrf.mxu1 }
 0x75c   :  { %v1764_v42 = vpop.f32.mrf.mxu0  ;;  %v1687_v47 = vadd.f32 %v1686_v41, %v1638_v45 }
 0x75d   :  { %v1765_v52 = vadd.f32 %v1764_v42, %v1638_v45 }
 0x75e   :  { %v1774_v58 = vmax.f32 %v1687_v47, 0.0 }
 0x75f   :  { %v1777_v59 = vmax.f32 %v1765_v52, 0.0 }
 0x763   :  { %v1689_v46 = vpop.f32.mrf.mxu1 }
 0x764   :  { %v1690_v48 = vadd.f32 %v1689_v46, %v1643_v43  ;;  %v1767_v50 = vpop.f32.mrf.mxu0 }
 0x765   :  { %v1768_v53 = vadd.f32 %v1767_v50, %v1643_v43 }
 0x766   :  { %v1778_v55 = vmax.f32 %v1690_v48, 0.0 }
 0x767   :  { %v1781_v57 = vmax.f32 %v1768_v53, 0.0 }
 0x768   :  { %2515 = vmatpush.msk.msra.mxu1 %vm1813_vm11, %v1778_v55 }
 0x769   :  { %2527 = vmatpush.msk.msrb.mxu0 %vm1813_vm11, %v1781_v57 }
 0x76a   :  { %1840 = vmatpush.msra.mxu1 %v1774_v58 }
 0x76b   :  { %1918 = vmatpush.msrb.mxu0 %v1777_v59 }
 0x76c   :  { %1841 = vmatpush.msra.mxu1 %v1770_v60 }
 0x76d   :  { %1919 = vmatpush.msrb.mxu0 %v1773_v62  ;;  %2516 = vmatmul.msk.f32.vlgmr.msra.gmra.mxu1 %vm1803_vm12, %v1782_v61 }
 0x76e   :  { %2528 = vmatmul.msk.f32.vlgmr.msrb.gmra.mxu0 %vm1803_vm12, %v1782_v61 }
 0x775   :  { %2517 = vmatmul.msk.f32.gmra.mxu1 %vm1803_vm12, %v1783_v63 }
 0x776   :  { %2529 = vmatmul.msk.f32.gmra.mxu0 %vm1803_vm12, %v1783_v63 }
 0x77d   :  { %2518 = vmatmul.msk.f32.gmra.mxu1 %vm1803_vm12, %v1784_v2 }
 0x77e   :  { %2530 = vmatmul.msk.f32.gmra.mxu0 %vm1803_vm12, %v1784_v2 }
 0x795   :  { %v1709_v3 = vpop.f32.mrf.mxu2 }
 0x796   :  { %v1735_v4 = vpop.f32.mrf.mxu3  ;;  %v1710_v0 = vadd.f32 %v1709_v3, %v1633_v51 }
 0x797   :  { %v1736_v15 = vadd.f32 %v1735_v4, %v1633_v51 }
 0x798   :  { %v1771_v19 = vmax.f32 %v1710_v0, 0.0 }
 0x799   :  { %v1772_v20 = vmax.f32 %v1736_v15, 0.0 }
 0x79d   :  { %v1712_v5 = vpop.f32.mrf.mxu2 }
 0x79e   :  { %v1738_v6 = vpop.f32.mrf.mxu3  ;;  %v1713_v8 = vadd.f32 %v1712_v5, %v1638_v45 }
 0x79f   :  { %v1739_v13 = vadd.f32 %v1738_v6, %v1638_v45 }
 0x7a0   :  { %v1775_v17 = vmax.f32 %v1713_v8, 0.0 }
 0x7a1   :  { %v1776_v18 = vmax.f32 %v1739_v13, 0.0 }
 0x7a5   :  { %v1715_v7 = vpop.f32.mrf.mxu2 }
 0x7a6   :  { %v1716_v11 = vadd.f32 %v1715_v7, %v1643_v43  ;;  %v1741_v12 = vpop.f32.mrf.mxu3 }
 0x7a7   :  { %v1742_v14 = vadd.f32 %v1741_v12, %v1643_v43 }
 0x7a8   :  { %v1779_v1 = vmax.f32 %v1716_v11, 0.0 }
 0x7a9   :  { %v1780_v16 = vmax.f32 %v1742_v14, 0.0 }
 0x7aa   :  { %2519 = vmatpush.msk.msra.mxu2 %vm1813_vm11, %v1779_v1 }
 0x7ab   :  { %2523 = vmatpush.msk.msra.mxu3 %vm1813_vm11, %v1780_v16 }
 0x7ac   :  { %1866 = vmatpush.msra.mxu2 %v1775_v17 }
 0x7ad   :  { %1892 = vmatpush.msra.mxu3 %v1776_v18 }
 0x7ae   :  { %1867 = vmatpush.msra.mxu2 %v1771_v19 }
 0x7af   :  { %1893 = vmatpush.msra.mxu3 %v1772_v20  ;;  %2520 = vmatmul.msk.f32.vlgmr.msra.gmra.mxu2 %vm1803_vm12, %v1782_v61 }
 0x7b0   :  { %2524 = vmatmul.msk.f32.vlgmr.msra.gmra.mxu3 %vm1803_vm12, %v1782_v61 }
 0x7b7   :  { %2521 = vmatmul.msk.f32.gmra.mxu2 %vm1803_vm12, %v1783_v63 }
 0x7b8   :  { %2525 = vmatmul.msk.f32.gmra.mxu3 %vm1803_vm12, %v1783_v63 }
 0x7bf   :  { %2522 = vmatmul.msk.f32.gmra.mxu2 %vm1803_vm12, %v1784_v2 }
 0x7c0   :  { %2526 = vmatmul.msk.f32.gmra.mxu3 %vm1803_vm12, %v1784_v2 }
 0x7ea   :  { %v1843_v22 = vpop.f32.mrf.mxu1 }
 0x7eb   :  { %v1844_v9 = vadd.f32 %v1843_v22, %v3039_v21  ;;  %v1921_v10 = vpop.f32.mrf.mxu0 }
 0x7ec   :  { %v3043_v23 = vadd.f32 %v1921_v10, %v3039_v21 }
 0x7ed   :  { %v2531_v24 = vmul.f32 -1.442695, %v1844_v9  ;;  %v2007_v25 = vsel %vm2006_vm13, %v1844_v9, -inf  ;;  %v2096_v26 = vsel %vm2095_vm14, %v1844_v9, -inf }
 0x7ee   :  { %v2008_v49 = vrot.slane %v2007_v25, 4  ;;  %v2097_v27 = vrot.slane %v2096_v26, 4  ;;  %v2534_v44 = vmul.f32 -1.442695, %v3043_v23  ;;  %v2028_v28 = vsel %vm2006_vm13, %v3043_v23, -inf }
 0x7ef   :  { %2542 = vpow2.f32 %v2531_v24  ;;  %v2029_v29 = vrot.slane %v2028_v28, 4  ;;  %v2117_v30 = vsel %vm2095_vm14, %v3043_v23, -inf }
 0x7f0   :  { %v2009_v31 = vmax.f32 %v2007_v25, %v2008_v49  ;;  %v2098_v32 = vmax.f32 %v2096_v26, %v2097_v27  ;;  %2544 = vpow2.f32 %v2534_v44  ;;  %v2118_v33 = vrot.slane %v2117_v30, 4 }
 0x7f1   :  { %v2030_v34 = vmax.f32 %v2028_v28, %v2029_v29 }
 0x7f2   :  { %v2010_v36 = vrot.slane %v2009_v31, 2  ;;  %v2099_v37 = vrot.slane %v2098_v32, 2  ;;  %v2119_v38 = vmax.f32 %v2117_v30, %v2118_v33  ;;  %v1846_v39 = vpop.f32.mrf.mxu1 }
 0x7f3   :  { %v2031_v40 = vrot.slane %v2030_v34, 2  ;;  %v3055_v41 = vadd.f32 %v1846_v39, %v3052_v35  ;;  %v1924_v4 = vpop.f32.mrf.mxu0 }
 0x7f4   :  { %v2011_v42 = vmax.f32 %v2009_v31, %v2010_v36  ;;  %v2100_v43 = vmax.f32 %v2098_v32, %v2099_v37  ;;  %v2120_v45 = vrot.slane %v2119_v38, 2  ;;  %v3071_v1 = vadd.f32 %v1924_v4, %v3052_v35 }
 0x7f5   :  { %v2543_v46 = vpop.eup %2542  ;;  %v2032_v47 = vmax.f32 %v2030_v34, %v2031_v40  ;;  %v2184_v48 = vsel %vm1813_vm11, %v3055_v41, -inf  ;;  %v2261_v50 = vsel %vm2260_vm15, %v3055_v41, -inf }
 0x7f6   :  { %v2545_v51 = vpop.eup %2544  ;;  %v3061_v52 = vadd.f32 1.0, %v2543_v46  ;;  %v2012_v53 = vrot.slane %v2011_v42, 1  ;;  %v2101_v54 = vrot.slane %v2100_v43, 1  ;;  %v2121_v57 = vmax.f32 %v2119_v38, %v2120_v45 }
 0x7f7   :  { %v3063_v55 = vadd.f32 1.0, %v2545_v51  ;;  %v2033_v56 = vrot.slane %v2032_v47, 1  ;;  %v2185_v58 = vrot.slane %v2184_v48, 4  ;;  %v2262_v59 = vrot.slane %v2261_v50, 4 }
 0x7f8   :  { %2546 = vrcp.f32 %v3061_v52  ;;  %v2013_v60 = vmax.f32 %v2011_v42, %v2012_v53  ;;  %v2102_v61 = vmax.f32 %v2100_v43, %v2101_v54  ;;  %v2122_v3 = vrot.slane %v2121_v57, 1  ;;  %v3096_v43 = vpop.permute.xlu2 %1800 }
 0x7f9   :  { %2548 = vrcp.f32 %v3063_v55  ;;  %v2034_v2 = vmax.f32 %v2032_v47, %v2033_v56  ;;  %v2186_v5 = vmax.f32 %v2184_v48, %v2185_v58  ;;  %v2263_v6 = vmax.f32 %v2261_v50, %v2262_v59 }
 0x7fa   :  { %v2035_v62 = vsub.f32 %v1844_v9, %v2013_v60  ;;  %v2124_v63 = vsub.f32 %v1844_v9, %v2102_v61  ;;  %v2123_v13 = vmax.f32 %v2121_v57, %v2122_v3  ;;  %v2205_v9 = vsel %vm1813_vm11, %v3071_v1, -inf  ;;  %v1849_v36 = vpop.f32.mrf.mxu1 }
 0x7fb   :  { %v2038_v11 = vsub.f32 %v3043_v23, %v2034_v2  ;;  %v2187_v14 = vrot.slane %v2186_v5, 2  ;;  %v2264_v0 = vrot.slane %v2263_v6, 2  ;;  %v2282_v10 = vsel %vm2260_vm15, %v3071_v1, -inf }
 0x7fc   :  { %v2039_v7 = vmul.f32 1.442695, %v2035_v62  ;;  %v2128_v8 = vmul.f32 1.442695, %v2124_v63  ;;  %v2127_v18 = vsub.f32 %v3043_v23, %v2123_v13  ;;  %v2206_v49 = vrot.slane %v2205_v9, 4 }
 0x7fd   :  { %v2045_v15 = vmul.f32 1.442695, %v2038_v11  ;;  %v2188_v19 = vmax.f32 %v2186_v5, %v2187_v14  ;;  %v2265_v20 = vmax.f32 %v2263_v6, %v2264_v0  ;;  %v2283_v44 = vrot.slane %v2282_v10, 4  ;;  %v1927_v5 = vpop.f32.mrf.mxu0 }
 0x7fe   :  { %v3068_v12 = vpop.eup %2546  ;;  %2550 = vpow2.f32 %v2039_v7  ;;  %v2134_v22 = vmul.f32 1.442695, %v2127_v18  ;;  %v1955_v31 = vand.u32 2147483647, %v3061_v52  ;;  %v1957_v32 = vand.u32 2147483648, %v3061_v52 }
 0x7ff   :  { %v3073_v16 = vpop.eup %2548  ;;  %v1947_v17 = vmul.f32 %v3068_v12, %v3061_v52  ;;  %2552 = vpow2.f32 %v2128_v8  ;;  %v2189_v25 = vrot.slane %v2188_v19, 1  ;;  %v2266_v26 = vrot.slane %v2265_v20, 1 }
 0x800   :  { %2554 = vpow2.f32 %v2045_v15  ;;  %v1992_v24 = vmul.f32 %v3073_v16, %v3063_v55  ;;  %v2207_v34 = vmax.f32 %v2205_v9, %v2206_v49  ;;  %v2284_v48 = vmax.f32 %v2282_v10, %v2283_v44 }
 0x801   :  { %v1948_v27 = vsub.f32 1.0, %v1947_v17  ;;  %2556 = vpow2.f32 %v2134_v22  ;;  %v2190_v28 = vmax.f32 %v2188_v19, %v2189_v25  ;;  %v2267_v29 = vmax.f32 %v2265_v20, %v2266_v26 }
 0x802   :  { %v1993_v39 = vsub.f32 1.0, %v1992_v24  ;;  %v1850_v54 = vadd.f32 %v1849_v36, %v3096_v43  ;;  %v2208_v60 = vrot.slane %v2207_v34, 2  ;;  %v2285_v4 = vrot.slane %v2284_v48, 2 }
 0x803   :  { %v2212_v40 = vsub.f32 %v3055_v41, %v2190_v28  ;;  %v2289_v42 = vsub.f32 %v3055_v41, %v2267_v29  ;;  %v1949_v45 = vmul.f32 %v3068_v12, %v1948_v27  ;;  %vm1952_vm0 = vweird.f32 %v3068_v12 }
 0x804   :  { %v3084_v23 = vpop.eup %2550  ;;  %v2209_v3 = vmax.f32 %v2207_v34, %v2208_v60  ;;  %v2286_v0 = vmax.f32 %v2284_v48, %v2285_v4  ;;  %v1994_v17 = vmul.f32 %v3073_v16, %v1993_v39  ;;  %v1928_v19 = vadd.f32 %v1927_v5, %v3096_v43 }
 0x805   :  { %v3086_v30 = vpop.eup %2552  ;;  %v2051_v33 = vrot.slane %v3084_v23, 4  ;;  %v2216_v53 = vmul.f32 1.442695, %v2212_v40  ;;  %v2293_v59 = vmul.f32 1.442695, %v2289_v42  ;;  %vm1951_vm1 = vweird.f32 %v3061_v52 }
 0x806   :  { %v3091_v37 = vpop.eup %2554  ;;  %v2140_v38 = vrot.slane %v3086_v30, 6  ;;  %v2210_v14 = vrot.slane %v2209_v3, 1  ;;  %v2287_v10 = vrot.slane %v2286_v0, 1  ;;  %v1950_v25 = vadd.f32 %v3068_v12, %v1949_v45  ;;  %vm3135_vm3 = vmor %vm1951_vm1, %vm1952_vm0 }
 0x807   :  { %v2059_v46 = vsel %vm1813_vm11, %v2051_v33, 0.0  ;;  %v2054_v47 = vrot.slane %v3091_v37, 4  ;;  %v3103_v56 = vpop.eup %2556  ;;  %2558 = vpow2.f32 %v2216_v53  ;;  %vm1997_vm2 = vweird.f32 %v3073_v16 }
 0x808   :  { %v2060_v50 = vrot.slane %v2059_v46, 4  ;;  %v2148_v51 = vsel %vm1813_vm11, %v2140_v38, 0.0  ;;  %v2143_v63 = vrot.slane %v3103_v56, 6  ;;  %2560 = vpow2.f32 %v2293_v59 }
 0x809   :  { %v2149_v57 = vrot.slane %v2148_v51, 4  ;;  %v2080_v58 = vsel %vm1813_vm11, %v2054_v47, 0.0  ;;  %2562 = vtanh.f32 %v1850_v54  ;;  %v2211_v9 = vmax.f32 %v2209_v3, %v2210_v14 }
 0x80a   :  { %v2061_v61 = vadd.f32 %v2060_v50, %v2059_v46  ;;  %v2081_v62 = vrot.slane %v2080_v58, 4  ;;  %v2169_v8 = vsel %vm1813_vm11, %v2143_v63, 0.0  ;;  %2564 = vtanh.f32 %v1928_v19 }
 0x80b   :  { %v2150_v2 = vadd.f32 %v2149_v57, %v2148_v51  ;;  %v2170_v13 = vrot.slane %v2169_v8, 4  ;;  %v2215_v33 = vsub.f32 %v3071_v1, %v2211_v9  ;;  %v2288_v47 = vmax.f32 %v2286_v0, %v2287_v10 }
 0x80c   :  { %v2062_v6 = vrot.slane %v2061_v61, 2  ;;  %v2082_v7 = vadd.f32 %v2081_v62, %v2080_v58  ;;  %v1995_v59 = vadd.f32 %v3073_v16, %v1994_v17  ;;  %vm3141_vm4 = vcmp.eq.f32.partialorder %v1955_v31, 8.507059e+37 }
 0x80d   :  { %v2151_v11 = vrot.slane %v2150_v2, 2  ;;  %v2171_v22 = vadd.f32 %v2170_v13, %v2169_v8  ;;  %v3112_v24 = vpop.eup %2558  ;;  %v2222_v46 = vmul.f32 1.442695, %v2215_v33  ;;  %v2292_v57 = vsub.f32 %v3071_v1, %v2288_v47 }
 0x80e   :  { %v2063_v15 = vadd.f32 %v2062_v6, %v2061_v61  ;;  %v2083_v18 = vrot.slane %v2082_v7, 2  ;;  %v3115_v27 = vpop.eup %2560  ;;  %v2224_v29 = vsel %vm1813_vm11, %v3112_v24, 0.0  ;;  %vm1996_vm5 = vweird.f32 %v3063_v55 }
 0x80f   :  { %v2152_v20 = vadd.f32 %v2151_v11, %v2150_v2  ;;  %v2172_v28 = vrot.slane %v2171_v22, 2  ;;  %v2563_v34 = vpop.eup %2562  ;;  %v2225_v39 = vrot.slane %v2224_v29, 4  ;;  %v2305_v40 = vrot.slane %v3115_v27, 2  ;;  %vm3155_vm7 = vmor %vm1996_vm5, %vm1997_vm2 }
 0x810   :  { %v2064_v26 = vrot.slane %v2063_v15, 1  ;;  %v2084_v49 = vadd.f32 %v2083_v18, %v2082_v7  ;;  %2383 = vst [vmem:[%s3356_s3 + $0x40] sm:$0x3] %v2563_v34  ;;  %v2565_v58 = vpop.eup %2564  ;;  %v2299_v63 = vmul.f32 1.442695, %v2292_v57  ;;  %v2002_v4 = vand.u32 2147483648, %v3063_v55 }
 0x811   :  { %v2153_v44 = vrot.slane %v2152_v20, 1  ;;  %v2173_v45 = vadd.f32 %v2172_v28, %v2171_v22  ;;  %v2226_v50 = vadd.f32 %v2225_v39, %v2224_v29  ;;  %v2313_v51 = vsel %vm1813_vm11, %v2305_v40, 0.0  ;;  %2386 = vst [vmem:[%s3356_s3 + $0x58] sm:$0x3] %v2565_v58 }
 0x812   :  { %v2065_v36 = vadd.f32 %v2064_v26, %v2063_v15  ;;  %v2085_v38 = vrot.slane %v2084_v49, 1  ;;  %v2314_v54 = vrot.slane %v2313_v51, 4  ;;  %v1954_v6 = vsel %vm3135_vm3, %v3068_v12, %v1950_v25 }
 0x813   :  { %v2154_v42 = vadd.f32 %v2153_v44, %v2152_v20  ;;  %v2174_v53 = vrot.slane %v2173_v45, 1  ;;  %v2227_v60 = vrot.slane %v2226_v50, 2  ;;  %v2000_v7 = vand.u32 2147483647, %v3063_v55 }
 0x814   :  { %2566 = vrcp.f32 %v2065_v36  ;;  %v2086_v48 = vadd.f32 %v2085_v38, %v2084_v49  ;;  %v2315_v62 = vadd.f32 %v2314_v54, %v2313_v51  ;;  %v1958_v31 = vor.u32 1.1754944e-38, %v1957_v32 }
 0x815   :  { %2568 = vrcp.f32 %v2154_v42  ;;  %v2175_v61 = vadd.f32 %v2174_v53, %v2173_v45  ;;  %v2228_v5 = vadd.f32 %v2227_v60, %v2226_v50  ;;  %v1999_v55 = vsel %vm3155_vm7, %v3073_v16, %v1995_v59 }
 0x816   :  { %2570 = vrcp.f32 %v2086_v48  ;;  %v2316_v8 = vrot.slane %v2315_v62, 2  ;;  %v1959_v32 = vsel %vm3141_vm4, %v1958_v31, %v1954_v6  ;;  %v2003_v18 = vor.u32 1.1754944e-38, %v2002_v4 }
 0x817   :  { %2572 = vpow2.f32 %v2222_v46  ;;  %v2229_v14 = vrot.slane %v2228_v5, 1  ;;  %vm2001_vm9 = vcmp.eq.f32.partialorder %v2000_v7, 8.507059e+37 }
 0x818   :  { %2574 = vrcp.f32 %v2175_v61  ;;  %v2317_v15 = vadd.f32 %v2316_v8, %v2315_v62  ;;  %v2004_v25 = vsel %vm2001_vm9, %v2003_v18, %v1999_v55 }
 0x819   :  { %2576 = vpow2.f32 %v2299_v63  ;;  %v2230_v19 = vadd.f32 %v2229_v14, %v2228_v5 }
 0x81a   :  { %v2567_v11 = vpop.eup %2566  ;;  %v2318_v9 = vrot.slane %v2317_v15, 1 }
 0x81b   :  { %v2569_v0 = vpop.eup %2568  ;;  %v2091_v12 = vmul.f32 %v2567_v11, %v3084_v23  ;;  %2578 = vrcp.f32 %v2230_v19 }
 0x81c   :  { %v2571_v52 = vpop.eup %2570  ;;  %v2180_v17 = vmul.f32 %v2569_v0, %v3086_v30  ;;  %v2319_v49 = vadd.f32 %v2318_v9, %v2317_v15 }
 0x81d   :  { %v2573_v20 = vpop.eup %2572  ;;  %v2358_v22 = vsel %vm2357_vm6, %v1959_v32, %v2091_v12  ;;  %v2094_v23 = vmul.f32 %v2571_v52, %v3091_v37 }
 0x81e   :  { %v2363_v10 = vsel %vm2362_vm8, %v2358_v22, %v2180_v17  ;;  %v2245_v16 = vsel %vm1813_vm11, %v2573_v20, 0.0  ;;  %v2575_v26 = vpop.eup %2574  ;;  %2580 = vrcp.f32 %v2319_v49 }
 0x81f   :  { %2375 = vst [vmem:[%s3356_s3] sm:$0xff] %v2363_v10  ;;  %v2361_v30 = vsel %vm2357_vm6, %v2004_v25, %v2094_v23  ;;  %v2246_v44 = vrot.slane %v2245_v16, 4  ;;  %v2577_v28 = vpop.eup %2576  ;;  %v2183_v29 = vmul.f32 %v2575_v26, %v3103_v56  ;;  %2582 = vtanh.f32 %v3055_v41 }
 0x820   :  { %v2308_v33 = vrot.slane %v2577_v28, 2 }
 0x821   :  { %v2247_v37 = vadd.f32 %v2246_v44, %v2245_v16  ;;  %v2366_v34 = vsel %vm2362_vm8, %v2361_v30, %v2183_v29  ;;  %v2579_v40 = vpop.eup %2578 }
 0x822   :  { %2378 = vst [vmem:[%s3356_s3 + $0x18] sm:$0xff] %v2366_v34  ;;  %v2334_v38 = vsel %vm1813_vm11, %v2308_v33, 0.0  ;;  %v2256_v47 = vmul.f32 %v2579_v40, %v3112_v24 }
 0x823   :  { %v2248_v36 = vrot.slane %v2247_v37, 2  ;;  %v2335_v39 = vrot.slane %v2334_v38, 4 }
 0x824   :  { %v2581_v46 = vpop.eup %2580 }
 0x825   :  { %v2249_v42 = vadd.f32 %v2248_v36, %v2247_v37  ;;  %v2336_v45 = vadd.f32 %v2335_v39, %v2334_v38  ;;  %v2345_v48 = vmul.f32 %v2581_v46, %v3115_v27  ;;  %v2583_v53 = vpop.eup %2582 }
 0x827   :  { %v2250_v56 = vrot.slane %v2249_v42, 1  ;;  %v2337_v50 = vrot.slane %v2336_v45, 2  ;;  %v2367_v54 = vsel %vm1813_vm11, %v2256_v47, %v2345_v48 }
 0x828   :  { %v2371_v58 = vsel %vm2357_vm6, %v2367_v54, %v2583_v53 }
 0x829   :  { %v2251_v51 = vadd.f32 %v2250_v56, %v2249_v42  ;;  %v2338_v57 = vadd.f32 %v2337_v50, %v2336_v45  ;;  %2379 = vst [vmem:[%s3356_s3 + $0x20] sm:$0xff] %v2371_v58 }
 0x82b   :  { %v2339_v41 = vrot.slane %v2338_v57, 1  ;;  %2584 = vrcp.f32 %v2251_v51 }
 0x82d   :  { %v2340_v59 = vadd.f32 %v2339_v41, %v2338_v57 }
 0x82f   :  { %2586 = vrcp.f32 %v2340_v59 }
 0x830   :  { %2588 = vtanh.f32 %v3071_v1 }
 0x831   :  { %v2585_v61 = vpop.eup %2584 }
 0x832   :  { %v1869_v60 = vpop.f32.mrf.mxu2  ;;  %v2259_v11 = vmul.f32 %v2585_v61, %v2573_v20 }
 0x833   :  { %v1870_v24 = vadd.f32 %v1869_v60, %v3039_v21  ;;  %v1895_v27 = vpop.f32.mrf.mxu3 }
 0x834   :  { %v3191_v62 = vadd.f32 %v1895_v27, %v3039_v21 }
 0x835   :  { %v2532_v63 = vmul.f32 -1.442695, %v1870_v24  ;;  %v2014_v2 = vsel %vm2006_vm13, %v1870_v24, -inf  ;;  %v2103_v3 = vsel %vm2095_vm14, %v1870_v24, -inf  ;;  %v2587_v8 = vpop.eup %2586 }
 0x836   :  { %v2015_v4 = vrot.slane %v2014_v2, 4  ;;  %v2104_v5 = vrot.slane %v2103_v3, 4  ;;  %v2533_v6 = vmul.f32 -1.442695, %v3191_v62  ;;  %v2021_v7 = vsel %vm2006_vm13, %v3191_v62, -inf  ;;  %v2589_v55 = vpop.eup %2588 }
 0x837   :  { %2590 = vpow2.f32 %v2532_v63  ;;  %v2022_v31 = vrot.slane %v2021_v7, 4  ;;  %v2110_v21 = vsel %vm2095_vm14, %v3191_v62, -inf  ;;  %v2348_v1 = vmul.f32 %v2587_v8, %v2577_v28 }
 0x838   :  { %v2016_v13 = vmax.f32 %v2014_v2, %v2015_v4  ;;  %v2105_v14 = vmax.f32 %v2103_v3, %v2104_v5  ;;  %2592 = vpow2.f32 %v2533_v6  ;;  %v2111_v12 = vrot.slane %v2110_v21, 4 }
 0x839   :  { %v2023_v0 = vmax.f32 %v2021_v7, %v2022_v31  ;;  %v2370_v15 = vsel %vm1813_vm11, %v2259_v11, %v2348_v1 }
 0x83a   :  { %v2017_v52 = vrot.slane %v2016_v13, 2  ;;  %v2106_v32 = vrot.slane %v2105_v14, 2  ;;  %v1872_v17 = vpop.f32.mrf.mxu2  ;;  %v2374_v18 = vsel %vm2357_vm6, %v2370_v15, %v2589_v55  ;;  %v2112_v20 = vmax.f32 %v2110_v21, %v2111_v12 }
 0x83b   :  { %v2024_v19 = vrot.slane %v2023_v0, 2  ;;  %v3203_v22 = vadd.f32 %v1872_v17, %v3052_v35  ;;  %2382 = vst [vmem:[%s3356_s3 + $0x38] sm:$0xff] %v2374_v18  ;;  %v1898_v36 = vpop.f32.mrf.mxu3 }
 0x83c   :  { %v2018_v23 = vmax.f32 %v2016_v13, %v2017_v52  ;;  %v2107_v9 = vmax.f32 %v2105_v14, %v2106_v32  ;;  %v2113_v16 = vrot.slane %v2112_v20, 2  ;;  %v3219_v45 = vadd.f32 %v1898_v36, %v3052_v35 }
 0x83d   :  { %v2591_v10 = vpop.eup %2590  ;;  %v2025_v25 = vmax.f32 %v2023_v0, %v2024_v19  ;;  %v2191_v26 = vsel %vm1813_vm11, %v3203_v22, -inf  ;;  %v2268_v30 = vsel %vm2260_vm15, %v3203_v22, -inf }
 0x83e   :  { %v2593_v49 = vpop.eup %2592  ;;  %v3212_v44 = vadd.f32 1.0, %v2591_v10  ;;  %v2019_v28 = vrot.slane %v2018_v23, 1  ;;  %v2108_v29 = vrot.slane %v2107_v9, 1  ;;  %v2114_v34 = vmax.f32 %v2112_v20, %v2113_v16 }
 0x83f   :  { %v3214_v37 = vadd.f32 1.0, %v2593_v49  ;;  %v2026_v33 = vrot.slane %v2025_v25, 1  ;;  %v2192_v38 = vrot.slane %v2191_v26, 4  ;;  %v2269_v39 = vrot.slane %v2268_v30, 4 }
 0x840   :  { %2594 = vrcp.f32 %v3212_v44  ;;  %v2020_v40 = vmax.f32 %v2018_v23, %v2019_v28  ;;  %v2109_v42 = vmax.f32 %v2107_v9, %v2108_v29  ;;  %v2115_v48 = vrot.slane %v2114_v34, 1 }
 0x841   :  { %2596 = vrcp.f32 %v3214_v37  ;;  %v2027_v47 = vmax.f32 %v2025_v25, %v2026_v33  ;;  %v2193_v50 = vmax.f32 %v2191_v26, %v2192_v38  ;;  %v2270_v51 = vmax.f32 %v2268_v30, %v2269_v39 }
 0x842   :  { %v2036_v46 = vsub.f32 %v1870_v24, %v2020_v40  ;;  %v2125_v56 = vsub.f32 %v1870_v24, %v2109_v42  ;;  %v2116_v58 = vmax.f32 %v2114_v34, %v2115_v48  ;;  %v2198_v35 = vsel %vm1813_vm11, %v3219_v45, -inf  ;;  %v1875_v32 = vpop.f32.mrf.mxu2 }
 0x843   :  { %v2037_v57 = vsub.f32 %v3191_v62, %v2027_v47  ;;  %v2194_v59 = vrot.slane %v2193_v50, 2  ;;  %v2271_v60 = vrot.slane %v2270_v51, 2  ;;  %v2199_v5 = vrot.slane %v2198_v35, 4  ;;  %v1901_v48 = vpop.f32.mrf.mxu3 }
 0x844   :  { %v2041_v53 = vmul.f32 1.442695, %v2036_v46  ;;  %v2130_v54 = vmul.f32 1.442695, %v2125_v56  ;;  %v2126_v63 = vsub.f32 %v3191_v62, %v2116_v58  ;;  %v2275_v6 = vsel %vm2260_vm15, %v3219_v45, -inf }
 0x845   :  { %v2043_v27 = vmul.f32 1.442695, %v2037_v57  ;;  %v2195_v2 = vmax.f32 %v2193_v50, %v2194_v59  ;;  %v2272_v3 = vmax.f32 %v2270_v51, %v2271_v60  ;;  %v2200_v21 = vmax.f32 %v2198_v35, %v2199_v5 }
 0x846   :  { %v3222_v41 = vpop.eup %2594  ;;  %2598 = vpow2.f32 %v2041_v53  ;;  %v2132_v4 = vmul.f32 1.442695, %v2126_v63  ;;  %v2276_v1 = vrot.slane %v2275_v6, 4  ;;  %v1970_v12 = vand.u32 2147483647, %v3212_v44 }
 0x847   :  { %v3226_v61 = vpop.eup %2596  ;;  %v1962_v24 = vmul.f32 %v3222_v41, %v3212_v44  ;;  %2600 = vpow2.f32 %v2130_v54  ;;  %v2196_v8 = vrot.slane %v2195_v2, 1  ;;  %v2273_v11 = vrot.slane %v2272_v3, 1 }
 0x848   :  { %2602 = vpow2.f32 %v2043_v27  ;;  %v1977_v7 = vmul.f32 %v3226_v61, %v3214_v37  ;;  %v1972_v55 = vand.u32 2147483648, %v3212_v44  ;;  %v2201_v52 = vrot.slane %v2200_v21, 2 }
 0x849   :  { %v1963_v31 = vsub.f32 1.0, %v1962_v24  ;;  %2604 = vpow2.f32 %v2132_v4  ;;  %v2197_v62 = vmax.f32 %v2195_v2, %v2196_v8  ;;  %v2274_v14 = vmax.f32 %v2272_v3, %v2273_v11 }
 0x84a   :  { %v1978_v19 = vsub.f32 1.0, %v1977_v7  ;;  %v2277_v16 = vmax.f32 %v2275_v6, %v2276_v1  ;;  %v1876_v28 = vadd.f32 %v1875_v32, %v3096_v43  ;;  %v2202_v38 = vmax.f32 %v2200_v21, %v2201_v52 }
 0x84b   :  { %v2213_v20 = vsub.f32 %v3203_v22, %v2197_v62  ;;  %v2290_v23 = vsub.f32 %v3203_v22, %v2274_v14  ;;  %v1964_v9 = vmul.f32 %v3222_v41, %v1963_v31  ;;  %vm1967_vm10 = vweird.f32 %v3222_v41 }
 0x84c   :  { %v3235_v13 = vpop.eup %2598  ;;  %v2203_v56 = vrot.slane %v2202_v38, 1  ;;  %v2278_v47 = vrot.slane %v2277_v16, 2  ;;  %v1979_v27 = vmul.f32 %v3226_v61, %v1978_v19  ;;  %v1902_v24 = vadd.f32 %v1901_v48, %v3096_v43 }
 0x84d   :  { %v3237_v0 = vpop.eup %2600  ;;  %v2052_v15 = vrot.slane %v3235_v13, 4  ;;  %v2218_v49 = vmul.f32 1.442695, %v2213_v20  ;;  %v2295_v36 = vmul.f32 1.442695, %v2290_v23  ;;  %vm1966_vm12 = vweird.f32 %v3212_v44 }
 0x84e   :  { %v3242_v17 = vpop.eup %2602  ;;  %v2141_v18 = vrot.slane %v3237_v0, 6  ;;  %v2204_v58 = vmax.f32 %v2202_v38, %v2203_v56  ;;  %v2279_v59 = vmax.f32 %v2277_v16, %v2278_v47  ;;  %v1965_v6 = vadd.f32 %v3222_v41, %v1964_v9  ;;  %vm3285_vm14 = vmor %vm1966_vm12, %vm1967_vm10 }
 0x84f   :  { %v2066_v10 = vsel %vm1813_vm11, %v2052_v15, 0.0  ;;  %v2053_v25 = vrot.slane %v3242_v17, 4  ;;  %v3252_v29 = vpop.eup %2604  ;;  %2606 = vpow2.f32 %v2218_v49  ;;  %vm1982_vm13 = vweird.f32 %v3226_v61 }
 0x850   :  { %v2067_v26 = vrot.slane %v2066_v10, 4  ;;  %v2155_v30 = vsel %vm1813_vm11, %v2141_v18, 0.0  ;;  %v2142_v42 = vrot.slane %v3252_v29, 6  ;;  %2608 = vpow2.f32 %v2295_v36 }
 0x851   :  { %v2156_v33 = vrot.slane %v2155_v30, 4  ;;  %v2073_v34 = vsel %vm1813_vm11, %v2053_v25, 0.0  ;;  %2610 = vtanh.f32 %v1876_v28  ;;  %v2214_v3 = vsub.f32 %v3219_v45, %v2204_v58 }
 0x852   :  { %v2068_v39 = vadd.f32 %v2067_v26, %v2066_v10  ;;  %v2074_v40 = vrot.slane %v2073_v34, 4  ;;  %v2162_v53 = vsel %vm1813_vm11, %v2142_v42, 0.0  ;;  %v2280_v4 = vrot.slane %v2279_v59, 1 }
 0x853   :  { %v2157_v46 = vadd.f32 %v2156_v33, %v2155_v30  ;;  %v2163_v57 = vrot.slane %v2162_v53, 4  ;;  %2612 = vtanh.f32 %v1902_v24  ;;  %v2220_v1 = vmul.f32 1.442695, %v2214_v3 }
 0x854   :  { %v2069_v50 = vrot.slane %v2068_v39, 2  ;;  %v2075_v51 = vadd.f32 %v2074_v40, %v2073_v34  ;;  %v2281_v20 = vmax.f32 %v2279_v59, %v2280_v4  ;;  %v1985_v49 = vand.u32 2147483647, %v3214_v37 }
 0x855   :  { %v2158_v54 = vrot.slane %v2157_v46, 2  ;;  %v2164_v2 = vadd.f32 %v2163_v57, %v2162_v53  ;;  %v3262_v5 = vpop.eup %2606  ;;  %2614 = vpow2.f32 %v2220_v1  ;;  %v1980_v33 = vadd.f32 %v3226_v61, %v1979_v27 }
 0x856   :  { %v2070_v60 = vadd.f32 %v2069_v50, %v2068_v39  ;;  %v2076_v35 = vrot.slane %v2075_v51, 2  ;;  %v3265_v11 = vpop.eup %2608  ;;  %v2231_v43 = vsel %vm1813_vm11, %v3262_v5, 0.0  ;;  %v2291_v26 = vsub.f32 %v3219_v45, %v2281_v20 }
 0x857   :  { %v2159_v63 = vadd.f32 %v2158_v54, %v2157_v46  ;;  %v2165_v21 = vrot.slane %v2164_v2, 2  ;;  %v2611_v62 = vpop.eup %2610  ;;  %v2232_v52 = vrot.slane %v2231_v43, 4  ;;  %v2306_v32 = vrot.slane %v3265_v11, 2 }
 0x858   :  { %v2071_v7 = vrot.slane %v2070_v60, 1  ;;  %v2077_v8 = vadd.f32 %v2076_v35, %v2075_v51  ;;  %2384 = vst [vmem:[%s3356_s3 + $0x48] sm:$0x3] %v2611_v62  ;;  %v2297_v38 = vmul.f32 1.442695, %v2291_v26  ;;  %vm3291_vm15 = vcmp.eq.f32.partialorder %v1970_v12, 8.507059e+37 }
 0x859   :  { %v2160_v31 = vrot.slane %v2159_v63, 1  ;;  %v2166_v19 = vadd.f32 %v2165_v21, %v2164_v2  ;;  %v2233_v9 = vadd.f32 %v2232_v52, %v2231_v43  ;;  %v2320_v10 = vsel %vm1813_vm11, %v2306_v32, 0.0  ;;  %v2613_v30 = vpop.eup %2612 }
 0x85a   :  { %v2072_v14 = vadd.f32 %v2071_v7, %v2070_v60  ;;  %v2078_v15 = vrot.slane %v2077_v8, 1  ;;  %v2321_v16 = vrot.slane %v2320_v10, 4  ;;  %2385 = vst [vmem:[%s3356_s3 + $0x50] sm:$0x3] %v2613_v30  ;;  %vm1981_vm0 = vweird.f32 %v3214_v37 }
 0x85b   :  { %v2161_v18 = vadd.f32 %v2160_v31, %v2159_v63  ;;  %v2167_v25 = vrot.slane %v2166_v19, 1  ;;  %v2234_v28 = vrot.slane %v2233_v9, 2  ;;  %v1987_v42 = vand.u32 2147483648, %v3214_v37  ;;  %v3297_v56 = vpop.eup %2614  ;;  %vm3306_vm1 = vmor %vm1981_vm0, %vm1982_vm13 }
 0x85c   :  { %2616 = vrcp.f32 %v2072_v14  ;;  %v2079_v23 = vadd.f32 %v2078_v15, %v2077_v8  ;;  %v2322_v36 = vadd.f32 %v2321_v16, %v2320_v10  ;;  %v1969_v47 = vsel %vm3285_vm14, %v3222_v41, %v1965_v6 }
 0x85d   :  { %2618 = vrcp.f32 %v2161_v18  ;;  %v2168_v34 = vadd.f32 %v2167_v25, %v2166_v19  ;;  %v2235_v46 = vadd.f32 %v2234_v28, %v2233_v9  ;;  %v1973_v48 = vor.u32 1.1754944e-38, %v1972_v55 }
 0x85e   :  { %2620 = vrcp.f32 %v2079_v23  ;;  %v2323_v50 = vrot.slane %v2322_v36, 2  ;;  %vm3310_vm2 = vcmp.eq.f32.partialorder %v1985_v49, 8.507059e+37  ;;  %v2238_v41 = vsel %vm1813_vm11, %v3297_v56, 0.0 }
 0x85f   :  { %2622 = vrcp.f32 %v2168_v34  ;;  %v2236_v53 = vrot.slane %v2235_v46, 1  ;;  %v1984_v54 = vsel %vm3306_vm1, %v3226_v61, %v1980_v33  ;;  %v2239_v58 = vrot.slane %v2238_v41, 4 }
 0x860   :  { %2624 = vpow2.f32 %v2297_v38  ;;  %v2324_v57 = vadd.f32 %v2323_v50, %v2322_v36  ;;  %v1974_v60 = vsel %vm3291_vm15, %v1973_v48, %v1969_v47  ;;  %v1988_v35 = vor.u32 1.1754944e-38, %v1987_v42 }
 0x861   :  { %v2237_v24 = vadd.f32 %v2236_v53, %v2235_v46 }
 0x862   :  { %v2617_v12 = vpop.eup %2616  ;;  %v2325_v3 = vrot.slane %v2324_v57, 1  ;;  %v1989_v61 = vsel %vm3310_vm2, %v1988_v35, %v1984_v54 }
 0x863   :  { %v2619_v44 = vpop.eup %2618  ;;  %v2092_v55 = vmul.f32 %v2617_v12, %v3235_v13  ;;  %v2240_v13 = vadd.f32 %v2239_v58, %v2238_v41  ;;  %2626 = vrcp.f32 %v2237_v24 }
 0x864   :  { %v2621_v59 = vpop.eup %2620  ;;  %v2181_v27 = vmul.f32 %v2619_v44, %v3237_v0  ;;  %v2326_v7 = vadd.f32 %v2325_v3, %v2324_v57 }
 0x865   :  { %v2359_v63 = vsel %vm2357_vm6, %v1974_v60, %v2092_v55  ;;  %v2093_v2 = vmul.f32 %v2621_v59, %v3242_v17  ;;  %v2623_v6 = vpop.eup %2622  ;;  %v2241_v8 = vrot.slane %v2240_v13, 2 }
 0x866   :  { %v2364_v4 = vsel %vm2362_vm8, %v2359_v63, %v2181_v27  ;;  %v2625_v31 = vpop.eup %2624  ;;  %v2182_v17 = vmul.f32 %v2623_v6, %v3252_v29  ;;  %2628 = vrcp.f32 %v2326_v7 }
 0x867   :  { %2376 = vst [vmem:[%s3356_s3 + $0x8] sm:$0xff] %v2364_v4  ;;  %v2360_v0 = vsel %vm2357_vm6, %v1989_v61, %v2093_v2  ;;  %v2307_v21 = vrot.slane %v2625_v31, 2  ;;  %v2242_v1 = vadd.f32 %v2241_v8, %v2240_v13  ;;  %2630 = vtanh.f32 %v3203_v22 }
 0x868   :  { %v2365_v43 = vsel %vm2362_vm8, %v2360_v0, %v2182_v17 }
 0x869   :  { %2377 = vst [vmem:[%s3356_s3 + $0x10] sm:$0xff] %v2365_v43  ;;  %v2327_v62 = vsel %vm1813_vm11, %v2307_v21, 0.0  ;;  %v2627_v15 = vpop.eup %2626  ;;  %v2243_v52 = vrot.slane %v2242_v1, 1 }
 0x86a   :  { %v2328_v14 = vrot.slane %v2327_v62, 4  ;;  %v2257_v29 = vmul.f32 %v2627_v15, %v3262_v5 }
 0x86b   :  { %v2244_v10 = vadd.f32 %v2243_v52, %v2242_v1 }
 0x86c   :  { %v2329_v32 = vadd.f32 %v2328_v14, %v2327_v62  ;;  %v2629_v18 = vpop.eup %2628 }
 0x86d   :  { %v2346_v19 = vmul.f32 %v2629_v18, %v3265_v11  ;;  %v2631_v23 = vpop.eup %2630  ;;  %2632 = vrcp.f32 %v2244_v10 }
 0x86e   :  { %v2330_v20 = vrot.slane %v2329_v32, 2 }
 0x86f   :  { %v2368_v9 = vsel %vm1813_vm11, %v2257_v29, %v2346_v19 }
 0x870   :  { %v2331_v25 = vadd.f32 %v2330_v20, %v2329_v32  ;;  %v2372_v16 = vsel %vm2357_vm6, %v2368_v9, %v2631_v23 }
 0x871   :  { %2380 = vst [vmem:[%s3356_s3 + $0x28] sm:$0xff] %v2372_v16 }
 0x872   :  { %v2332_v22 = vrot.slane %v2331_v25, 1 }
 0x873   :  { %v2633_v5 = vpop.eup %2632 }
 0x874   :  { %v2333_v26 = vadd.f32 %v2332_v22, %v2331_v25  ;;  %v2258_v30 = vmul.f32 %v2633_v5, %v3297_v56 }
 0x876   :  { %2634 = vrcp.f32 %v2333_v26 }
 0x877   :  { %2636 = vtanh.f32 %v3219_v45 }
 0x87c   :  { %v2635_v11 = vpop.eup %2634 }
 0x87d   :  { %v2347_v49 = vmul.f32 %v2635_v11, %v2625_v31  ;;  %v2637_v28 = vpop.eup %2636 }
 0x87f   :  { %v2369_v33 = vsel %vm1813_vm11, %v2258_v30, %v2347_v49 }
 0x880   :  { %v2373_v34 = vsel %vm2357_vm6, %v2369_v33, %v2637_v28 }
 0x881   :  { %2381 = vst [vmem:[%s3356_s3 + $0x30] sm:$0xff] %v2373_v34 }
 0x882   :  { %2391 = vsyncpa [#allocation3], 1 }

</bundles_post_ra>
